<compile_context>
chip_gen: v5e
topology: v5e:2x2
jax: 0.10.0
libtpu: 0.0.40
codegen_flags: <defaults>
</compile_context>

<pallas_src>
import functools

import jax
import jax.numpy as jnp
from jax.experimental import pallas as pl
from jax.experimental.pallas import tpu as pltpu

CIN, CSTEM, CMID, NUM_CLASSES = 3, 32, 8, 10
CIN_PAD = 8          # input channels zero-padded to a sublane-friendly count


def _round_up(v, m):
    return (v + m - 1) // m * m


# ----------------------------------------------------------------------------
# Fused Pallas kernel: one grid step == one image, everything in VMEM.
# ----------------------------------------------------------------------------
def _fused_kernel(x_ref, mask_ref,
                  ws_ref, bs_ref,
                  w1_ref, b1_ref,
                  w2_ref, b2_ref,
                  w3_ref, b3_ref,
                  wfc_ref, bfc_ref,
                  sel_ref, logits_ref,
                  *, wp, lpad, inv_hw):
    x = x_ref[0]                 # (CIN_PAD, LPAD) f32, spatially zero-padded
    mask = mask_ref[...]         # (1, LPAD)       f32, 1.0 on interior pixels

    def conv3x3(a_f32, w_taps_ref):
        """3x3 / stride-1 / pad-1 conv, channel-major, as 9 shifted MXU dots.

        On the flattened padded grid, reading tap (dy, dx) for every output
        pixel is a constant shift of (dy-1)*wp + (dx-1); wrap-around only
        pollutes halo pixels, which are masked out downstream."""
        acc = None
        k = 0
        for dy in range(3):
            for dx in range(3):
                shift = ((1 - dy) * wp + (1 - dx)) % lpad
                shifted = pltpu.roll(a_f32, shift, 1) if shift else a_f32
                part = jnp.dot(w_taps_ref[k],
                               shifted.astype(jnp.bfloat16),
                               preferred_element_type=jnp.float32)
                acc = part if acc is None else acc + part
                k += 1
        return acc

    # stem: conv3x3 + bias + ReLU                              -> (CSTEM, LPAD)
    h0 = jnp.maximum(conv3x3(x, ws_ref) + bs_ref[...], 0.0)

    # bottleneck block (the hooked "layer4[2]"): 1x1 -> 3x3 -> 1x1 + residual
    h1 = jnp.dot(w1_ref[...], h0.astype(jnp.bfloat16),
                 preferred_element_type=jnp.float32) + b1_ref[...]
    h1 = jnp.maximum(h1, 0.0) * mask        # zero halo == conv zero padding
    h2 = jnp.maximum(conv3x3(h1, w2_ref) + b2_ref[...], 0.0)
    h3 = jnp.dot(w3_ref[...], h2.astype(jnp.bfloat16),
                 preferred_element_type=jnp.float32) + b3_ref[...] + h0
    h3 = jnp.maximum(h3, 0.0) * mask                           # (CSTEM, LPAD)

    # lane-dense (>=128-wide) store of the hooked activation, channel-major
    sel_ref[0] = h3.astype(sel_ref.dtype)

    # fused GAP + FC:  sum_pix(Wfc^T @ h3) * 1/(H*W)  ==  Wfc^T @ GAP(h3)
    fc = jnp.dot(wfc_ref[...], h3.astype(jnp.bfloat16),
                 preferred_element_type=jnp.float32)           # (NCLS, LPAD)
    logits = jnp.sum(fc, axis=1, keepdims=True) * inv_hw + bfc_ref[...]
    logits_ref[0] = logits.astype(logits_ref.dtype)            # (NCLS, 1)


# ----------------------------------------------------------------------------
# Wrapper (layout plumbing only) + pallas_call
# ----------------------------------------------------------------------------
def gradcam_forward(x_nchw, params):
    """Returns (logits, selected_out) like GradCamModel.forward.

    x_nchw       : (N, CIN, H, W) f32  (PyTorch NCHW convention)
    logits       : (N, NUM_CLASSES) f32
    selected_out : (N, CSTEM, H, W) f32 -- activation of the hooked block."""
    N, C, H, W = x_nchw.shape
    hp, wp = H + 2, W + 2
    lpad = _round_up(hp * wp, 128)

    # XLA-side layout plumbing: spatial zero-pad + channel pad, flatten the
    # padded grid onto the lane axis, round it up to 128 lanes.
    xp = jnp.pad(x_nchw, ((0, 0), (0, CIN_PAD - C), (1, 1), (1, 1)))
    xf = jnp.pad(xp.reshape(N, CIN_PAD, hp * wp),
                 ((0, 0), (0, 0), (0, lpad - hp * wp)))

    # interior-pixel mask over the flattened padded grid (constant-folded)
    idx = jnp.arange(lpad)
    py, px = idx // wp, idx % wp
    interior = (py >= 1) & (py <= H) & (px >= 1) & (px <= W) & (idx < hp * wp)
    mask = interior.astype(jnp.float32)[None, :]               # (1, LPAD)

    kernel = functools.partial(_fused_kernel, wp=wp, lpad=lpad,
                               inv_hw=1.0 / float(H * W))

    sel_pad, logits_col = pl.pallas_call(
        kernel,
        out_shape=(
            jax.ShapeDtypeStruct((N, CSTEM, lpad), jnp.float32),
            jax.ShapeDtypeStruct((N, NUM_CLASSES, 1), jnp.float32),
        ),
        grid_spec=pltpu.PrefetchScalarGridSpec(
            num_scalar_prefetch=0,
            grid=(N,),
            in_specs=[
                pl.BlockSpec((1, CIN_PAD, lpad), lambda i: (i, 0, 0)),     # x
                pl.BlockSpec((1, lpad), lambda i: (0, 0)),                 # mask
                pl.BlockSpec((9, CSTEM, CIN_PAD), lambda i: (0, 0, 0)),    # stem taps
                pl.BlockSpec((CSTEM, 1), lambda i: (0, 0)),                # b_stem
                pl.BlockSpec((CMID, CSTEM), lambda i: (0, 0)),             # w1^T
                pl.BlockSpec((CMID, 1), lambda i: (0, 0)),                 # b1
                pl.BlockSpec((9, CMID, CMID), lambda i: (0, 0, 0)),        # w2 taps
                pl.BlockSpec((CMID, 1), lambda i: (0, 0)),                 # b2
                pl.BlockSpec((CSTEM, CMID), lambda i: (0, 0)),             # w3^T
                pl.BlockSpec((CSTEM, 1), lambda i: (0, 0)),                # b3
                pl.BlockSpec((NUM_CLASSES, CSTEM), lambda i: (0, 0)),      # w_fc^T
                pl.BlockSpec((NUM_CLASSES, 1), lambda i: (0, 0)),          # b_fc
            ],
            out_specs=(
                pl.BlockSpec((1, CSTEM, lpad), lambda i: (i, 0, 0)),       # selected
                pl.BlockSpec((1, NUM_CLASSES, 1), lambda i: (i, 0, 0)),    # logits
            ),
        ),
        compiler_params=pltpu.CompilerParams(
            dimension_semantics=("parallel",)),
    )(xf, mask,
      params["w_stem_t"], params["b_stem"],
      params["w1_t"], params["b1"],
      params["w2_t"], params["b2"],
      params["w3_t"], params["b3"],
      params["w_fc_t"], params["b_fc"])

    selected_out = sel_pad[:, :, :hp * wp].reshape(N, CSTEM, hp, wp)[:, :, 1:1 + H, 1:1 + W]
    logits = logits_col[:, :, 0]
    return logits, selected_out


# ----------------------------------------------------------------------------
# Deterministic scaled-down parameters (channel-major, bf16 MXU operands)
# ----------------------------------------------------------------------------
def init_params(key):
    ks = jax.random.split(key, 5)
    bf16 = jnp.bfloat16

    def w(k, shape, fan_in):
        return jax.random.normal(k, shape, jnp.float32) / jnp.sqrt(float(fan_in))

    # 3x3 conv weights generated in HWIO, repacked per-tap channel-major
    # (Cout, Cin) for the in-kernel  out = W^T @ x  matmuls.
    w_stem = w(ks[0], (3, 3, CIN, CSTEM), 9 * CIN).reshape(9, CIN, CSTEM)
    w_stem_t = jnp.pad(jnp.transpose(w_stem, (0, 2, 1)),
                       ((0, 0), (0, 0), (0, CIN_PAD - CIN)))    # (9, CSTEM, 8)
    w2 = w(ks[2], (3, 3, CMID, CMID), 9 * CMID).reshape(9, CMID, CMID)
    w2_t = jnp.transpose(w2, (0, 2, 1))                         # (9, CMID, CMID)

    return {
        "w_stem_t": w_stem_t.astype(bf16),
        "b_stem": jnp.zeros((CSTEM, 1), jnp.float32),
        "w1_t": w(ks[1], (CSTEM, CMID), CSTEM).T.astype(bf16),          # (CMID, CSTEM)
        "b1": jnp.zeros((CMID, 1), jnp.float32),
        "w2_t": w2_t.astype(bf16),
        "b2": jnp.zeros((CMID, 1), jnp.float32),
        "w3_t": w(ks[3], (CMID, CSTEM), CMID).T.astype(bf16),           # (CSTEM, CMID)
        "b3": jnp.zeros((CSTEM, 1), jnp.float32),
        "w_fc_t": w(ks[4], (CSTEM, NUM_CLASSES), CSTEM).T.astype(bf16), # (NCLS, CSTEM)
        "b_fc": jnp.zeros((NUM_CLASSES, 1), jnp.float32),
    }


# ----------------------------------------------------------------------------
# Plain-JAX reference (same bf16-operand / f32-accumulate math) for checking
# ----------------------------------------------------------------------------
def reference_forward(x_nchw, params):
    N, C, H, W = x_nchw.shape
    bf16, f32 = jnp.bfloat16, jnp.float32

    def dotf(a, b):
        return jnp.dot(a.astype(bf16), b.astype(bf16), preferred_element_type=f32)

    def im2col3x3(a_nhwc):      # (N,H,W,C) -> (N*H*W, 9*C), tap order (dy,dx,ci)
        n, h, w_, c = a_nhwc.shape
        ap = jnp.pad(a_nhwc, ((0, 0), (1, 1), (1, 1), (0, 0)))
        cols = [ap[:, dy:dy + h, dx:dx + w_, :]
                for dy in range(3) for dx in range(3)]
        return jnp.concatenate(cols, axis=-1).reshape(n * h * w_, 9 * c)

    # rebuild row-major f32 weights from the packed bf16 params
    w_stem = jnp.transpose(params["w_stem_t"][:, :, :C].astype(f32),
                           (0, 2, 1)).reshape(9 * C, CSTEM)
    w1 = params["w1_t"].astype(f32).T
    w2 = jnp.transpose(params["w2_t"].astype(f32), (0, 2, 1)).reshape(9 * CMID, CMID)
    w3 = params["w3_t"].astype(f32).T
    w_fc = params["w_fc_t"].astype(f32).T

    x = jnp.transpose(x_nchw, (0, 2, 3, 1))                            # NHWC
    h0 = jnp.maximum(dotf(im2col3x3(x), w_stem) + params["b_stem"].T, 0.0)
    h1 = jnp.maximum(dotf(h0, w1) + params["b1"].T, 0.0)
    h2 = jnp.maximum(dotf(im2col3x3(h1.reshape(N, H, W, CMID)), w2)
                     + params["b2"].T, 0.0)
    h3 = jnp.maximum(dotf(h2, w3) + params["b3"].T + h0, 0.0)          # (NHW, CSTEM)
    selected = jnp.transpose(h3.reshape(N, H, W, CSTEM), (0, 3, 1, 2))
    fc_pix = dotf(h3, w_fc).reshape(N, H * W, NUM_CLASSES)
    logits = jnp.mean(fc_pix, axis=1) + params["b_fc"].T
    return logits, selected


if __name__ == "__main__":
    key = jax.random.PRNGKey(0)
    k_x, k_p = jax.random.split(key)
    x = jax.random.normal(k_x, (2, CIN, 16, 16), jnp.float32)   # NCHW input
    params = init_params(k_p)

    logits, selected_out = jax.jit(gradcam_forward)(x, params)
    jax.block_until_ready((logits, selected_out))

    assert logits.shape == (2, NUM_CLASSES)
    assert selected_out.shape == (2, CSTEM, 16, 16)

    ref_logits, ref_selected = jax.jit(reference_forward)(x, params)
    assert jnp.allclose(logits, ref_logits, atol=3e-2, rtol=3e-2), \
        float(jnp.max(jnp.abs(logits - ref_logits)))
    assert jnp.allclose(selected_out, ref_selected, atol=3e-2, rtol=3e-2), \
        float(jnp.max(jnp.abs(selected_out - ref_selected)))
    print("KERNEL_OK")
</pallas_src>

<mosaic_0001>
module attributes {stable_mosaic.version = 11 : i64} {
  func.func @_fused_kernel(%arg0: i32, %arg1: memref<1x8x384xf32, #tpu.memory_space<vmem>>, %arg2: memref<1x384xf32, #tpu.memory_space<vmem>>, %arg3: memref<9x32x8xbf16, #tpu.memory_space<vmem>>, %arg4: memref<32x1xf32, #tpu.memory_space<vmem>>, %arg5: memref<8x32xbf16, #tpu.memory_space<vmem>>, %arg6: memref<8x1xf32, #tpu.memory_space<vmem>>, %arg7: memref<9x8x8xbf16, #tpu.memory_space<vmem>>, %arg8: memref<8x1xf32, #tpu.memory_space<vmem>>, %arg9: memref<32x8xbf16, #tpu.memory_space<vmem>>, %arg10: memref<32x1xf32, #tpu.memory_space<vmem>>, %arg11: memref<10x32xbf16, #tpu.memory_space<vmem>>, %arg12: memref<10x1xf32, #tpu.memory_space<vmem>>, %arg13: memref<1x32x384xf32, #tpu.memory_space<vmem>>, %arg14: memref<1x10x1xf32, #tpu.memory_space<vmem>>) attributes {dimension_semantics = [#tpu.dimension_semantics<parallel>], iteration_bounds = array<i64: 2>, scalar_prefetch = 0 : i64, scratch_operands = 0 : i64, tpu.core_type = #tpu.core_type<tc>, window_params = [{transform_indices = @transform_0, window_bounds = array<i64: 1, 8, 384>}, {pipeline_mode = #tpu.pipeline_mode<synchronous>, transform_indices = @transform_1, window_bounds = array<i64: 1, 384>}, {pipeline_mode = #tpu.pipeline_mode<synchronous>, transform_indices = @transform_2, window_bounds = array<i64: 9, 32, 8>}, {pipeline_mode = #tpu.pipeline_mode<synchronous>, transform_indices = @transform_3, window_bounds = array<i64: 32, 1>}, {pipeline_mode = #tpu.pipeline_mode<synchronous>, transform_indices = @transform_4, window_bounds = array<i64: 8, 32>}, {pipeline_mode = #tpu.pipeline_mode<synchronous>, transform_indices = @transform_5, window_bounds = array<i64: 8, 1>}, {pipeline_mode = #tpu.pipeline_mode<synchronous>, transform_indices = @transform_6, window_bounds = array<i64: 9, 8, 8>}, {pipeline_mode = #tpu.pipeline_mode<synchronous>, transform_indices = @transform_7, window_bounds = array<i64: 8, 1>}, {pipeline_mode = #tpu.pipeline_mode<synchronous>, transform_indices = @transform_8, window_bounds = array<i64: 32, 8>}, {pipeline_mode = #tpu.pipeline_mode<synchronous>, transform_indices = @transform_9, window_bounds = array<i64: 32, 1>}, {pipeline_mode = #tpu.pipeline_mode<synchronous>, transform_indices = @transform_10, window_bounds = array<i64: 10, 32>}, {pipeline_mode = #tpu.pipeline_mode<synchronous>, transform_indices = @transform_11, window_bounds = array<i64: 10, 1>}, {transform_indices = @transform_12, window_bounds = array<i64: 1, 32, 384>}, {transform_indices = @transform_13, window_bounds = array<i64: 1, 10, 1>}]} {
    %c0 = arith.constant 0 : index
    %c0_0 = arith.constant 0 : index
    %c0_1 = arith.constant 0 : index
    %0 = vector.load %arg1[%c0, %c0_0, %c0_1] : memref<1x8x384xf32, #tpu.memory_space<vmem>>, vector<1x8x384xf32>
    %1 = vector.shape_cast %0 : vector<1x8x384xf32> to vector<8x384xf32>
    %c0_2 = arith.constant 0 : index
    %c0_3 = arith.constant 0 : index
    %2 = vector.load %arg2[%c0_2, %c0_3] : memref<1x384xf32, #tpu.memory_space<vmem>>, vector<1x384xf32>
    %c19_i32 = arith.constant 19 : i32
    %3 = tpu.dynamic_rotate %1 by %c19_i32 dim 1 : vector<8x384xf32>, i32 -> vector<8x384xf32>
    %c0_4 = arith.constant 0 : index
    %c0_5 = arith.constant 0 : index
    %c0_6 = arith.constant 0 : index
    %4 = vector.load %arg3[%c0_4, %c0_5, %c0_6] : memref<9x32x8xbf16, #tpu.memory_space<vmem>>, vector<1x32x8xbf16>
    %5 = vector.shape_cast %4 : vector<1x32x8xbf16> to vector<32x8xbf16>
    %6 = arith.truncf %3 : vector<8x384xf32> to vector<8x384xbf16>
    %cst = arith.constant dense<0.000000e+00> : vector<32x384xf32>
    %7 = tpu.matmul %5, %6, %cst {dimension_numbers = #tpu.dot_dimension_numbers<[1], [0], [0], [1], [0, 0, 1, 1], [], []>} : vector<32x8xbf16>, vector<8x384xbf16>, vector<32x384xf32> -> vector<32x384xf32>
    %c18_i32 = arith.constant 18 : i32
    %8 = tpu.dynamic_rotate %1 by %c18_i32 dim 1 : vector<8x384xf32>, i32 -> vector<8x384xf32>
    %c1 = arith.constant 1 : index
    %c0_7 = arith.constant 0 : index
    %c0_8 = arith.constant 0 : index
    %9 = vector.load %arg3[%c1, %c0_7, %c0_8] : memref<9x32x8xbf16, #tpu.memory_space<vmem>>, vector<1x32x8xbf16>
    %10 = vector.shape_cast %9 : vector<1x32x8xbf16> to vector<32x8xbf16>
    %11 = arith.truncf %8 : vector<8x384xf32> to vector<8x384xbf16>
    %cst_9 = arith.constant dense<0.000000e+00> : vector<32x384xf32>
    %12 = tpu.matmul %10, %11, %cst_9 {dimension_numbers = #tpu.dot_dimension_numbers<[1], [0], [0], [1], [0, 0, 1, 1], [], []>} : vector<32x8xbf16>, vector<8x384xbf16>, vector<32x384xf32> -> vector<32x384xf32>
    %13 = arith.addf %7, %12 : vector<32x384xf32>
    %c17_i32 = arith.constant 17 : i32
    %14 = tpu.dynamic_rotate %1 by %c17_i32 dim 1 : vector<8x384xf32>, i32 -> vector<8x384xf32>
    %c2 = arith.constant 2 : index
    %c0_10 = arith.constant 0 : index
    %c0_11 = arith.constant 0 : index
    %15 = vector.load %arg3[%c2, %c0_10, %c0_11] : memref<9x32x8xbf16, #tpu.memory_space<vmem>>, vector<1x32x8xbf16>
    %16 = vector.shape_cast %15 : vector<1x32x8xbf16> to vector<32x8xbf16>
    %17 = arith.truncf %14 : vector<8x384xf32> to vector<8x384xbf16>
    %cst_12 = arith.constant dense<0.000000e+00> : vector<32x384xf32>
    %18 = tpu.matmul %16, %17, %cst_12 {dimension_numbers = #tpu.dot_dimension_numbers<[1], [0], [0], [1], [0, 0, 1, 1], [], []>} : vector<32x8xbf16>, vector<8x384xbf16>, vector<32x384xf32> -> vector<32x384xf32>
    %19 = arith.addf %13, %18 : vector<32x384xf32>
    %c1_i32 = arith.constant 1 : i32
    %20 = tpu.dynamic_rotate %1 by %c1_i32 dim 1 : vector<8x384xf32>, i32 -> vector<8x384xf32>
    %c3 = arith.constant 3 : index
    %c0_13 = arith.constant 0 : index
    %c0_14 = arith.constant 0 : index
    %21 = vector.load %arg3[%c3, %c0_13, %c0_14] : memref<9x32x8xbf16, #tpu.memory_space<vmem>>, vector<1x32x8xbf16>
    %22 = vector.shape_cast %21 : vector<1x32x8xbf16> to vector<32x8xbf16>
    %23 = arith.truncf %20 : vector<8x384xf32> to vector<8x384xbf16>
    %cst_15 = arith.constant dense<0.000000e+00> : vector<32x384xf32>
    %24 = tpu.matmul %22, %23, %cst_15 {dimension_numbers = #tpu.dot_dimension_numbers<[1], [0], [0], [1], [0, 0, 1, 1], [], []>} : vector<32x8xbf16>, vector<8x384xbf16>, vector<32x384xf32> -> vector<32x384xf32>
    %25 = arith.addf %19, %24 : vector<32x384xf32>
    %c4 = arith.constant 4 : index
    %c0_16 = arith.constant 0 : index
    %c0_17 = arith.constant 0 : index
    %26 = vector.load %arg3[%c4, %c0_16, %c0_17] : memref<9x32x8xbf16, #tpu.memory_space<vmem>>, vector<1x32x8xbf16>
    %27 = vector.shape_cast %26 : vector<1x32x8xbf16> to vector<32x8xbf16>
    %28 = arith.truncf %1 : vector<8x384xf32> to vector<8x384xbf16>
    %cst_18 = arith.constant dense<0.000000e+00> : vector<32x384xf32>
    %29 = tpu.matmul %27, %28, %cst_18 {dimension_numbers = #tpu.dot_dimension_numbers<[1], [0], [0], [1], [0, 0, 1, 1], [], []>} : vector<32x8xbf16>, vector<8x384xbf16>, vector<32x384xf32> -> vector<32x384xf32>
    %30 = arith.addf %25, %29 : vector<32x384xf32>
    %c383_i32 = arith.constant 383 : i32
    %31 = tpu.dynamic_rotate %1 by %c383_i32 dim 1 : vector<8x384xf32>, i32 -> vector<8x384xf32>
    %c5 = arith.constant 5 : index
    %c0_19 = arith.constant 0 : index
    %c0_20 = arith.constant 0 : index
    %32 = vector.load %arg3[%c5, %c0_19, %c0_20] : memref<9x32x8xbf16, #tpu.memory_space<vmem>>, vector<1x32x8xbf16>
    %33 = vector.shape_cast %32 : vector<1x32x8xbf16> to vector<32x8xbf16>
    %34 = arith.truncf %31 : vector<8x384xf32> to vector<8x384xbf16>
    %cst_21 = arith.constant dense<0.000000e+00> : vector<32x384xf32>
    %35 = tpu.matmul %33, %34, %cst_21 {dimension_numbers = #tpu.dot_dimension_numbers<[1], [0], [0], [1], [0, 0, 1, 1], [], []>} : vector<32x8xbf16>, vector<8x384xbf16>, vector<32x384xf32> -> vector<32x384xf32>
    %36 = arith.addf %30, %35 : vector<32x384xf32>
    %c367_i32 = arith.constant 367 : i32
    %37 = tpu.dynamic_rotate %1 by %c367_i32 dim 1 : vector<8x384xf32>, i32 -> vector<8x384xf32>
    %c6 = arith.constant 6 : index
    %c0_22 = arith.constant 0 : index
    %c0_23 = arith.constant 0 : index
    %38 = vector.load %arg3[%c6, %c0_22, %c0_23] : memref<9x32x8xbf16, #tpu.memory_space<vmem>>, vector<1x32x8xbf16>
    %39 = vector.shape_cast %38 : vector<1x32x8xbf16> to vector<32x8xbf16>
    %40 = arith.truncf %37 : vector<8x384xf32> to vector<8x384xbf16>
    %cst_24 = arith.constant dense<0.000000e+00> : vector<32x384xf32>
    %41 = tpu.matmul %39, %40, %cst_24 {dimension_numbers = #tpu.dot_dimension_numbers<[1], [0], [0], [1], [0, 0, 1, 1], [], []>} : vector<32x8xbf16>, vector<8x384xbf16>, vector<32x384xf32> -> vector<32x384xf32>
    %42 = arith.addf %36, %41 : vector<32x384xf32>
    %c366_i32 = arith.constant 366 : i32
    %43 = tpu.dynamic_rotate %1 by %c366_i32 dim 1 : vector<8x384xf32>, i32 -> vector<8x384xf32>
    %c7 = arith.constant 7 : index
    %c0_25 = arith.constant 0 : index
    %c0_26 = arith.constant 0 : index
    %44 = vector.load %arg3[%c7, %c0_25, %c0_26] : memref<9x32x8xbf16, #tpu.memory_space<vmem>>, vector<1x32x8xbf16>
    %45 = vector.shape_cast %44 : vector<1x32x8xbf16> to vector<32x8xbf16>
    %46 = arith.truncf %43 : vector<8x384xf32> to vector<8x384xbf16>
    %cst_27 = arith.constant dense<0.000000e+00> : vector<32x384xf32>
    %47 = tpu.matmul %45, %46, %cst_27 {dimension_numbers = #tpu.dot_dimension_numbers<[1], [0], [0], [1], [0, 0, 1, 1], [], []>} : vector<32x8xbf16>, vector<8x384xbf16>, vector<32x384xf32> -> vector<32x384xf32>
    %48 = arith.addf %42, %47 : vector<32x384xf32>
    %c365_i32 = arith.constant 365 : i32
    %49 = tpu.dynamic_rotate %1 by %c365_i32 dim 1 : vector<8x384xf32>, i32 -> vector<8x384xf32>
    %c8 = arith.constant 8 : index
    %c0_28 = arith.constant 0 : index
    %c0_29 = arith.constant 0 : index
    %50 = vector.load %arg3[%c8, %c0_28, %c0_29] : memref<9x32x8xbf16, #tpu.memory_space<vmem>>, vector<1x32x8xbf16>
    %51 = vector.shape_cast %50 : vector<1x32x8xbf16> to vector<32x8xbf16>
    %52 = arith.truncf %49 : vector<8x384xf32> to vector<8x384xbf16>
    %cst_30 = arith.constant dense<0.000000e+00> : vector<32x384xf32>
    %53 = tpu.matmul %51, %52, %cst_30 {dimension_numbers = #tpu.dot_dimension_numbers<[1], [0], [0], [1], [0, 0, 1, 1], [], []>} : vector<32x8xbf16>, vector<8x384xbf16>, vector<32x384xf32> -> vector<32x384xf32>
    %54 = arith.addf %48, %53 : vector<32x384xf32>
    %c0_31 = arith.constant 0 : index
    %c0_32 = arith.constant 0 : index
    %55 = vector.load %arg4[%c0_31, %c0_32] : memref<32x1xf32, #tpu.memory_space<vmem>>, vector<32x1xf32>
    %56 = vector.broadcast %55 : vector<32x1xf32> to vector<32x384xf32>
    %57 = arith.addf %54, %56 : vector<32x384xf32>
    %cst_33 = arith.constant 0.000000e+00 : f32
    %58 = vector.broadcast %cst_33 : f32 to vector<32x384xf32>
    %59 = arith.maximumf %57, %58 : vector<32x384xf32>
    %c0_34 = arith.constant 0 : index
    %c0_35 = arith.constant 0 : index
    %60 = vector.load %arg5[%c0_34, %c0_35] : memref<8x32xbf16, #tpu.memory_space<vmem>>, vector<8x32xbf16>
    %61 = arith.truncf %59 : vector<32x384xf32> to vector<32x384xbf16>
    %cst_36 = arith.constant dense<0.000000e+00> : vector<8x384xf32>
    %62 = tpu.matmul %60, %61, %cst_36 {dimension_numbers = #tpu.dot_dimension_numbers<[1], [0], [0], [1], [0, 0, 1, 1], [], []>} : vector<8x32xbf16>, vector<32x384xbf16>, vector<8x384xf32> -> vector<8x384xf32>
    %c0_37 = arith.constant 0 : index
    %c0_38 = arith.constant 0 : index
    %63 = vector.load %arg6[%c0_37, %c0_38] : memref<8x1xf32, #tpu.memory_space<vmem>>, vector<8x1xf32>
    %64 = vector.broadcast %63 : vector<8x1xf32> to vector<8x384xf32>
    %65 = arith.addf %62, %64 : vector<8x384xf32>
    %cst_39 = arith.constant 0.000000e+00 : f32
    %66 = vector.broadcast %cst_39 : f32 to vector<8x384xf32>
    %67 = arith.maximumf %65, %66 : vector<8x384xf32>
    %68 = vector.broadcast %2 : vector<1x384xf32> to vector<8x384xf32>
    %69 = arith.mulf %67, %68 : vector<8x384xf32>
    %c19_i32_40 = arith.constant 19 : i32
    %70 = tpu.dynamic_rotate %69 by %c19_i32_40 dim 1 : vector<8x384xf32>, i32 -> vector<8x384xf32>
    %c0_41 = arith.constant 0 : index
    %c0_42 = arith.constant 0 : index
    %c0_43 = arith.constant 0 : index
    %71 = vector.load %arg7[%c0_41, %c0_42, %c0_43] : memref<9x8x8xbf16, #tpu.memory_space<vmem>>, vector<1x8x8xbf16>
    %72 = vector.shape_cast %71 : vector<1x8x8xbf16> to vector<8x8xbf16>
    %73 = arith.truncf %70 : vector<8x384xf32> to vector<8x384xbf16>
    %cst_44 = arith.constant dense<0.000000e+00> : vector<8x384xf32>
    %74 = tpu.matmul %72, %73, %cst_44 {dimension_numbers = #tpu.dot_dimension_numbers<[1], [0], [0], [1], [0, 0, 1, 1], [], []>} : vector<8x8xbf16>, vector<8x384xbf16>, vector<8x384xf32> -> vector<8x384xf32>
    %c18_i32_45 = arith.constant 18 : i32
    %75 = tpu.dynamic_rotate %69 by %c18_i32_45 dim 1 : vector<8x384xf32>, i32 -> vector<8x384xf32>
    %c1_46 = arith.constant 1 : index
    %c0_47 = arith.constant 0 : index
    %c0_48 = arith.constant 0 : index
    %76 = vector.load %arg7[%c1_46, %c0_47, %c0_48] : memref<9x8x8xbf16, #tpu.memory_space<vmem>>, vector<1x8x8xbf16>
    %77 = vector.shape_cast %76 : vector<1x8x8xbf16> to vector<8x8xbf16>
    %78 = arith.truncf %75 : vector<8x384xf32> to vector<8x384xbf16>
    %cst_49 = arith.constant dense<0.000000e+00> : vector<8x384xf32>
    %79 = tpu.matmul %77, %78, %cst_49 {dimension_numbers = #tpu.dot_dimension_numbers<[1], [0], [0], [1], [0, 0, 1, 1], [], []>} : vector<8x8xbf16>, vector<8x384xbf16>, vector<8x384xf32> -> vector<8x384xf32>
    %80 = arith.addf %74, %79 : vector<8x384xf32>
    %c17_i32_50 = arith.constant 17 : i32
    %81 = tpu.dynamic_rotate %69 by %c17_i32_50 dim 1 : vector<8x384xf32>, i32 -> vector<8x384xf32>
    %c2_51 = arith.constant 2 : index
    %c0_52 = arith.constant 0 : index
    %c0_53 = arith.constant 0 : index
    %82 = vector.load %arg7[%c2_51, %c0_52, %c0_53] : memref<9x8x8xbf16, #tpu.memory_space<vmem>>, vector<1x8x8xbf16>
    %83 = vector.shape_cast %82 : vector<1x8x8xbf16> to vector<8x8xbf16>
    %84 = arith.truncf %81 : vector<8x384xf32> to vector<8x384xbf16>
    %cst_54 = arith.constant dense<0.000000e+00> : vector<8x384xf32>
    %85 = tpu.matmul %83, %84, %cst_54 {dimension_numbers = #tpu.dot_dimension_numbers<[1], [0], [0], [1], [0, 0, 1, 1], [], []>} : vector<8x8xbf16>, vector<8x384xbf16>, vector<8x384xf32> -> vector<8x384xf32>
    %86 = arith.addf %80, %85 : vector<8x384xf32>
    %c1_i32_55 = arith.constant 1 : i32
    %87 = tpu.dynamic_rotate %69 by %c1_i32_55 dim 1 : vector<8x384xf32>, i32 -> vector<8x384xf32>
    %c3_56 = arith.constant 3 : index
    %c0_57 = arith.constant 0 : index
    %c0_58 = arith.constant 0 : index
    %88 = vector.load %arg7[%c3_56, %c0_57, %c0_58] : memref<9x8x8xbf16, #tpu.memory_space<vmem>>, vector<1x8x8xbf16>
    %89 = vector.shape_cast %88 : vector<1x8x8xbf16> to vector<8x8xbf16>
    %90 = arith.truncf %87 : vector<8x384xf32> to vector<8x384xbf16>
    %cst_59 = arith.constant dense<0.000000e+00> : vector<8x384xf32>
    %91 = tpu.matmul %89, %90, %cst_59 {dimension_numbers = #tpu.dot_dimension_numbers<[1], [0], [0], [1], [0, 0, 1, 1], [], []>} : vector<8x8xbf16>, vector<8x384xbf16>, vector<8x384xf32> -> vector<8x384xf32>
    %92 = arith.addf %86, %91 : vector<8x384xf32>
    %c4_60 = arith.constant 4 : index
    %c0_61 = arith.constant 0 : index
    %c0_62 = arith.constant 0 : index
    %93 = vector.load %arg7[%c4_60, %c0_61, %c0_62] : memref<9x8x8xbf16, #tpu.memory_space<vmem>>, vector<1x8x8xbf16>
    %94 = vector.shape_cast %93 : vector<1x8x8xbf16> to vector<8x8xbf16>
    %95 = arith.truncf %69 : vector<8x384xf32> to vector<8x384xbf16>
    %cst_63 = arith.constant dense<0.000000e+00> : vector<8x384xf32>
    %96 = tpu.matmul %94, %95, %cst_63 {dimension_numbers = #tpu.dot_dimension_numbers<[1], [0], [0], [1], [0, 0, 1, 1], [], []>} : vector<8x8xbf16>, vector<8x384xbf16>, vector<8x384xf32> -> vector<8x384xf32>
    %97 = arith.addf %92, %96 : vector<8x384xf32>
    %c383_i32_64 = arith.constant 383 : i32
    %98 = tpu.dynamic_rotate %69 by %c383_i32_64 dim 1 : vector<8x384xf32>, i32 -> vector<8x384xf32>
    %c5_65 = arith.constant 5 : index
    %c0_66 = arith.constant 0 : index
    %c0_67 = arith.constant 0 : index
    %99 = vector.load %arg7[%c5_65, %c0_66, %c0_67] : memref<9x8x8xbf16, #tpu.memory_space<vmem>>, vector<1x8x8xbf16>
    %100 = vector.shape_cast %99 : vector<1x8x8xbf16> to vector<8x8xbf16>
    %101 = arith.truncf %98 : vector<8x384xf32> to vector<8x384xbf16>
    %cst_68 = arith.constant dense<0.000000e+00> : vector<8x384xf32>
    %102 = tpu.matmul %100, %101, %cst_68 {dimension_numbers = #tpu.dot_dimension_numbers<[1], [0], [0], [1], [0, 0, 1, 1], [], []>} : vector<8x8xbf16>, vector<8x384xbf16>, vector<8x384xf32> -> vector<8x384xf32>
    %103 = arith.addf %97, %102 : vector<8x384xf32>
    %c367_i32_69 = arith.constant 367 : i32
    %104 = tpu.dynamic_rotate %69 by %c367_i32_69 dim 1 : vector<8x384xf32>, i32 -> vector<8x384xf32>
    %c6_70 = arith.constant 6 : index
    %c0_71 = arith.constant 0 : index
    %c0_72 = arith.constant 0 : index
    %105 = vector.load %arg7[%c6_70, %c0_71, %c0_72] : memref<9x8x8xbf16, #tpu.memory_space<vmem>>, vector<1x8x8xbf16>
    %106 = vector.shape_cast %105 : vector<1x8x8xbf16> to vector<8x8xbf16>
    %107 = arith.truncf %104 : vector<8x384xf32> to vector<8x384xbf16>
    %cst_73 = arith.constant dense<0.000000e+00> : vector<8x384xf32>
    %108 = tpu.matmul %106, %107, %cst_73 {dimension_numbers = #tpu.dot_dimension_numbers<[1], [0], [0], [1], [0, 0, 1, 1], [], []>} : vector<8x8xbf16>, vector<8x384xbf16>, vector<8x384xf32> -> vector<8x384xf32>
    %109 = arith.addf %103, %108 : vector<8x384xf32>
    %c366_i32_74 = arith.constant 366 : i32
    %110 = tpu.dynamic_rotate %69 by %c366_i32_74 dim 1 : vector<8x384xf32>, i32 -> vector<8x384xf32>
    %c7_75 = arith.constant 7 : index
    %c0_76 = arith.constant 0 : index
    %c0_77 = arith.constant 0 : index
    %111 = vector.load %arg7[%c7_75, %c0_76, %c0_77] : memref<9x8x8xbf16, #tpu.memory_space<vmem>>, vector<1x8x8xbf16>
    %112 = vector.shape_cast %111 : vector<1x8x8xbf16> to vector<8x8xbf16>
    %113 = arith.truncf %110 : vector<8x384xf32> to vector<8x384xbf16>
    %cst_78 = arith.constant dense<0.000000e+00> : vector<8x384xf32>
    %114 = tpu.matmul %112, %113, %cst_78 {dimension_numbers = #tpu.dot_dimension_numbers<[1], [0], [0], [1], [0, 0, 1, 1], [], []>} : vector<8x8xbf16>, vector<8x384xbf16>, vector<8x384xf32> -> vector<8x384xf32>
    %115 = arith.addf %109, %114 : vector<8x384xf32>
    %c365_i32_79 = arith.constant 365 : i32
    %116 = tpu.dynamic_rotate %69 by %c365_i32_79 dim 1 : vector<8x384xf32>, i32 -> vector<8x384xf32>
    %c8_80 = arith.constant 8 : index
    %c0_81 = arith.constant 0 : index
    %c0_82 = arith.constant 0 : index
    %117 = vector.load %arg7[%c8_80, %c0_81, %c0_82] : memref<9x8x8xbf16, #tpu.memory_space<vmem>>, vector<1x8x8xbf16>
    %118 = vector.shape_cast %117 : vector<1x8x8xbf16> to vector<8x8xbf16>
    %119 = arith.truncf %116 : vector<8x384xf32> to vector<8x384xbf16>
    %cst_83 = arith.constant dense<0.000000e+00> : vector<8x384xf32>
    %120 = tpu.matmul %118, %119, %cst_83 {dimension_numbers = #tpu.dot_dimension_numbers<[1], [0], [0], [1], [0, 0, 1, 1], [], []>} : vector<8x8xbf16>, vector<8x384xbf16>, vector<8x384xf32> -> vector<8x384xf32>
    %121 = arith.addf %115, %120 : vector<8x384xf32>
    %c0_84 = arith.constant 0 : index
    %c0_85 = arith.constant 0 : index
    %122 = vector.load %arg8[%c0_84, %c0_85] : memref<8x1xf32, #tpu.memory_space<vmem>>, vector<8x1xf32>
    %123 = vector.broadcast %122 : vector<8x1xf32> to vector<8x384xf32>
    %124 = arith.addf %121, %123 : vector<8x384xf32>
    %cst_86 = arith.constant 0.000000e+00 : f32
    %125 = vector.broadcast %cst_86 : f32 to vector<8x384xf32>
    %126 = arith.maximumf %124, %125 : vector<8x384xf32>
    %c0_87 = arith.constant 0 : index
    %c0_88 = arith.constant 0 : index
    %127 = vector.load %arg9[%c0_87, %c0_88] : memref<32x8xbf16, #tpu.memory_space<vmem>>, vector<32x8xbf16>
    %128 = arith.truncf %126 : vector<8x384xf32> to vector<8x384xbf16>
    %cst_89 = arith.constant dense<0.000000e+00> : vector<32x384xf32>
    %129 = tpu.matmul %127, %128, %cst_89 {dimension_numbers = #tpu.dot_dimension_numbers<[1], [0], [0], [1], [0, 0, 1, 1], [], []>} : vector<32x8xbf16>, vector<8x384xbf16>, vector<32x384xf32> -> vector<32x384xf32>
    %c0_90 = arith.constant 0 : index
    %c0_91 = arith.constant 0 : index
    %130 = vector.load %arg10[%c0_90, %c0_91] : memref<32x1xf32, #tpu.memory_space<vmem>>, vector<32x1xf32>
    %131 = vector.broadcast %130 : vector<32x1xf32> to vector<32x384xf32>
    %132 = arith.addf %129, %131 : vector<32x384xf32>
    %133 = arith.addf %132, %59 : vector<32x384xf32>
    %cst_92 = arith.constant 0.000000e+00 : f32
    %134 = vector.broadcast %cst_92 : f32 to vector<32x384xf32>
    %135 = arith.maximumf %133, %134 : vector<32x384xf32>
    %136 = vector.broadcast %2 : vector<1x384xf32> to vector<32x384xf32>
    %137 = arith.mulf %135, %136 : vector<32x384xf32>
    %c0_93 = arith.constant 0 : index
    %c0_94 = arith.constant 0 : index
    %c0_95 = arith.constant 0 : index
    %138 = vector.load %arg13[%c0_93, %c0_94, %c0_95] : memref<1x32x384xf32, #tpu.memory_space<vmem>>, vector<1x32x384xf32>
    %139 = vector.shape_cast %138 : vector<1x32x384xf32> to vector<32x384xf32>
    %140 = vector.shape_cast %137 : vector<32x384xf32> to vector<1x32x384xf32>
    tpu.vector_store %arg13[%c0_93, %c0_94, %c0_95], %140 {strides = array<i32>} : memref<1x32x384xf32, #tpu.memory_space<vmem>>, vector<1x32x384xf32>,
    %c0_96 = arith.constant 0 : index
    %c0_97 = arith.constant 0 : index
    %141 = vector.load %arg11[%c0_96, %c0_97] : memref<10x32xbf16, #tpu.memory_space<vmem>>, vector<10x32xbf16>
    %142 = arith.truncf %137 : vector<32x384xf32> to vector<32x384xbf16>
    %cst_98 = arith.constant dense<0.000000e+00> : vector<10x384xf32>
    %143 = tpu.matmul %141, %142, %cst_98 {dimension_numbers = #tpu.dot_dimension_numbers<[1], [0], [0], [1], [0, 0, 1, 1], [], []>} : vector<10x32xbf16>, vector<32x384xbf16>, vector<10x384xf32> -> vector<10x384xf32>
    %cst_99 = arith.constant dense<0.000000e+00> : vector<10xf32>
    %144 = vector.multi_reduction <add>, %143, %cst_99 [1] : vector<10x384xf32> to vector<10xf32>
    %145 = vector.shape_cast %144 : vector<10xf32> to vector<10x1xf32>
    %cst_100 = arith.constant 3.906250e-03 : f32
    %146 = vector.broadcast %cst_100 : f32 to vector<10x1xf32>
    %147 = arith.mulf %145, %146 : vector<10x1xf32>
    %c0_101 = arith.constant 0 : index
    %c0_102 = arith.constant 0 : index
    %148 = vector.load %arg12[%c0_101, %c0_102] : memref<10x1xf32, #tpu.memory_space<vmem>>, vector<10x1xf32>
    %149 = arith.addf %147, %148 : vector<10x1xf32>
    %c0_103 = arith.constant 0 : index
    %c0_104 = arith.constant 0 : index
    %c0_105 = arith.constant 0 : index
    %150 = vector.load %arg14[%c0_103, %c0_104, %c0_105] : memref<1x10x1xf32, #tpu.memory_space<vmem>>, vector<1x10x1xf32>
    %151 = vector.shape_cast %150 : vector<1x10x1xf32> to vector<10x1xf32>
    %152 = vector.shape_cast %149 : vector<10x1xf32> to vector<1x10x1xf32>
    tpu.vector_store %arg14[%c0_103, %c0_104, %c0_105], %152 {strides = array<i32>} : memref<1x10x1xf32, #tpu.memory_space<vmem>>, vector<1x10x1xf32>,
    return
  }
  func.func @transform_0(%arg0: i32) -> (i32, i32, i32) {
    %c0_i32 = arith.constant 0 : i32
    %c0_i32_0 = arith.constant 0 : i32
    %c0_i32_1 = arith.constant 0 : i32
    return %arg0, %c0_i32, %c0_i32_0 : i32, i32, i32
  }
  func.func @transform_1(%arg0: i32) -> (i32, i32) {
    %c0_i32 = arith.constant 0 : i32
    %c0_i32_0 = arith.constant 0 : i32
    %c0_i32_1 = arith.constant 0 : i32
    return %c0_i32, %c0_i32_0 : i32, i32
  }
  func.func @transform_2(%arg0: i32) -> (i32, i32, i32) {
    %c0_i32 = arith.constant 0 : i32
    %c0_i32_0 = arith.constant 0 : i32
    %c0_i32_1 = arith.constant 0 : i32
    %c0_i32_2 = arith.constant 0 : i32
    return %c0_i32, %c0_i32_0, %c0_i32_1 : i32, i32, i32
  }
  func.func @transform_3(%arg0: i32) -> (i32, i32) {
    %c0_i32 = arith.constant 0 : i32
    %c0_i32_0 = arith.constant 0 : i32
    %c0_i32_1 = arith.constant 0 : i32
    return %c0_i32, %c0_i32_0 : i32, i32
  }
  func.func @transform_4(%arg0: i32) -> (i32, i32) {
    %c0_i32 = arith.constant 0 : i32
    %c0_i32_0 = arith.constant 0 : i32
    %c0_i32_1 = arith.constant 0 : i32
    return %c0_i32, %c0_i32_0 : i32, i32
  }
  func.func @transform_5(%arg0: i32) -> (i32, i32) {
    %c0_i32 = arith.constant 0 : i32
    %c0_i32_0 = arith.constant 0 : i32
    %c0_i32_1 = arith.constant 0 : i32
    return %c0_i32, %c0_i32_0 : i32, i32
  }
  func.func @transform_6(%arg0: i32) -> (i32, i32, i32) {
    %c0_i32 = arith.constant 0 : i32
    %c0_i32_0 = arith.constant 0 : i32
    %c0_i32_1 = arith.constant 0 : i32
    %c0_i32_2 = arith.constant 0 : i32
    return %c0_i32, %c0_i32_0, %c0_i32_1 : i32, i32, i32
  }
  func.func @transform_7(%arg0: i32) -> (i32, i32) {
    %c0_i32 = arith.constant 0 : i32
    %c0_i32_0 = arith.constant 0 : i32
    %c0_i32_1 = arith.constant 0 : i32
    return %c0_i32, %c0_i32_0 : i32, i32
  }
  func.func @transform_8(%arg0: i32) -> (i32, i32) {
    %c0_i32 = arith.constant 0 : i32
    %c0_i32_0 = arith.constant 0 : i32
    %c0_i32_1 = arith.constant 0 : i32
    return %c0_i32, %c0_i32_0 : i32, i32
  }
  func.func @transform_9(%arg0: i32) -> (i32, i32) {
    %c0_i32 = arith.constant 0 : i32
    %c0_i32_0 = arith.constant 0 : i32
    %c0_i32_1 = arith.constant 0 : i32
    return %c0_i32, %c0_i32_0 : i32, i32
  }
  func.func @transform_10(%arg0: i32) -> (i32, i32) {
    %c0_i32 = arith.constant 0 : i32
    %c0_i32_0 = arith.constant 0 : i32
    %c0_i32_1 = arith.constant 0 : i32
    return %c0_i32, %c0_i32_0 : i32, i32
  }
  func.func @transform_11(%arg0: i32) -> (i32, i32) {
    %c0_i32 = arith.constant 0 : i32
    %c0_i32_0 = arith.constant 0 : i32
    %c0_i32_1 = arith.constant 0 : i32
    return %c0_i32, %c0_i32_0 : i32, i32
  }
  func.func @transform_12(%arg0: i32) -> (i32, i32, i32) {
    %c0_i32 = arith.constant 0 : i32
    %c0_i32_0 = arith.constant 0 : i32
    %c0_i32_1 = arith.constant 0 : i32
    return %arg0, %c0_i32, %c0_i32_0 : i32, i32, i32
  }
  func.func @transform_13(%arg0: i32) -> (i32, i32, i32) {
    %c0_i32 = arith.constant 0 : i32
    %c0_i32_0 = arith.constant 0 : i32
    %c0_i32_1 = arith.constant 0 : i32
    return %arg0, %c0_i32, %c0_i32_0 : i32, i32, i32
  }
}

</mosaic_0001>

<bundles_post_ra>
// kernel: gradcam_forward.1
= control target key start
LH: loop header
LB: loop body
LE: loop exit
PB: predicated region body
PF: predicated region fallthrough
CT: control target
= control target key end

     0   :  { %s2929_s25 = smov 0   ;;  %s3730_s0 = inlined_call_operand.vmem [shape: f32[2,8,384], index: 0, kind: input, shape index: {}]   ;;  %s3731_s1 = inlined_call_operand.vmem [shape: f32[1,384], index: 1, kind: input, shape index: {}]   ;;  %s3732_s2 = inlined_call_operand.vmem [shape: bf16[9,32,8], index: 2, kind: input, shape index: {}]   ;;  %s3733_s3 = inlined_call_operand.vmem [shape: f32[32,1], index: 3, kind: input, shape index: {}]   ;;  %s3734_s4 = inlined_call_operand.vmem [shape: bf16[8,32], index: 4, kind: input, shape index: {}]   ;;  %s3735_s5 = inlined_call_operand.vmem [shape: f32[8,1], index: 5, kind: input, shape index: {}]   ;;  %s3736_s6 = inlined_call_operand.vmem [shape: bf16[9,8,8], index: 6, kind: input, shape index: {}]   ;;  %s3737_s7 = inlined_call_operand.vmem [shape: f32[8,1], index: 7, kind: input, shape index: {}]   ;;  %s3738_s8 = inlined_call_operand.vmem [shape: bf16[32,8], index: 8, kind: input, shape index: {}]   ;;  %s3739_s9 = inlined_call_operand.vmem [shape: f32[32,1], index: 9, kind: input, shape index: {}]   ;;  %s3740_s10 = inlined_call_operand.vmem [shape: bf16[10,32], index: 10, kind: input, shape index: {}]   ;;  %s3741_s11 = inlined_call_operand.vmem [shape: f32[10,1], index: 11, kind: input, shape index: {}]   ;;  %s3742_s12 = inlined_call_operand.vmem [shape: f32[2,32,384], index: 12, kind: output, shape index: {0}]   ;;  %s3743_s13 = inlined_call_operand.vmem [shape: f32[2,10,1], index: 13, kind: output, shape index: {1}]  }
   0x1 LB: > { %s2490_s26 = sadd.s32 4294967295, %s2848_s25   ;;  %p2494_p0 = scmp.ge.s32.totalorder %s2848_s25, 1  ;;  %s2848_s25 = sphi %s2929_s25, %s24_s25  }
   0x2   : > { %p390_p1 = scmp.lt.s32.totalorder %s2848_s25, 3 }
   0x4   : > { %p391_p2 = pnand %p2494_p0, %p390_p1 }
   0x6   : > { %394 = sbr.rel (%p391_p2) target bundleno = 1454 (0x5ae), region = 68 }
   0xb   : > { %p439_p3 = scmp.lt.s32.totalorder %s2490_s26, 1  ;;  %s2850_s14 = smov 19   ;;  %v465_v6 = vlaneseq  ;;  %vm513_vm3 = vcmask 1043456   ;;  %v2721_v25 = vld [vmem:[%s3732_s2 + $0x10] sm:$0xff]  ;;  %vm506_vm4 = vcmask 64512   ;;  %v2719_v46 = vld [vmem:[%s3732_s2] sm:$0xff] }
   0xc   : > { %s2851_s15 = smov 18   ;;  %s2852_s16 = smov 17   ;;  %v2722_v49 = vld [vmem:[%s3732_s2 + $0x18] sm:$0xff]  ;;  %v2720_v50 = vld [vmem:[%s3732_s2 + $0x8] sm:$0xff]  ;;  %v2723_v63 = vld [vmem:[%s3732_s2 + $0x20] sm:$0xff]  ;;  %vm1497_vm10 = vcmask 261120  }
   0xd   : > { %s3773_s26 = smov (!%p439_p3, %s2490_s26), 1  ;;  %s2853_s17 = smov 1   ;;  %v2983_v8 = vand.u32 127, %v465_v6  ;;  %vm2384_vm11 = vcmask 1041408   ;;  %vm2398_vm12 = vcmask 7168   ;;  %vm2400_vm13 = vcmask 1024  }
   0xe   : > { %s2740_s27 = smul.u32 24, %s3773_s26  ;;  %s2854_s18 = smov 127  }
   0xf   : > { %s2855_s19 = smov 111   ;;  %s2856_s20 = smov 110   ;;  %3746 = vst [vmem:[#allocation2_spill] sm:$0xff] %v2983_v8  ;;  %vm484_vm0 = vcmp.lt.s32.totalorder %v2983_v8, 18  ;;  %vm467_vm1 = vcmp.lt.s32.totalorder %v2983_v8, 19  ;;  %vm668_vm2 = vcmp.lt.s32.totalorder %v2983_v8, 17 }
  0x10   : > { %s443_s30 = scalar_lea.vmem %s3730_s0, %s2740_s27  ;;  %s2857_s29 = smov 109   ;;  %vm780_vm5 = vcmp.lt.s32.totalorder %v2983_v8, 1  ;;  %vm994_vm6 = vcmp.lt.s32.totalorder %v2983_v8, 127  ;;  %vm1106_vm7 = vcmp.lt.s32.totalorder %v2983_v8, 111  ;;  %vm1218_vm8 = vcmp.lt.s32.totalorder %v2983_v8, 110 }
  0x11   : > { %v2943_v0 = vld [vmem:[%s443_s30] sm:$0xff]  ;;  %v2945_v1 = vld [vmem:[%s443_s30 + $0x8] sm:$0xff]  ;;  %v2947_v2 = vld [vmem:[%s443_s30 + $0x10] sm:$0xff]  ;;  %vm1330_vm9 = vcmp.lt.s32.totalorder %v2983_v8, 109  ;;  %s2718_s24 = sshll.u32 %s3773_s26, 4 }
  0x12   : > { %v2951_v3 = vpack.i.bf16 %v2945_v1, %v2943_v0  ;;  %v2759_v4 = vpack.i.bf16 %v2947_v2, %v2943_v0  ;;  %v2973_v5 = vpack.i.bf16 %v2947_v2, %v2945_v1  ;;  %v891_v6 = vpack.c.bf16 %v2943_v0, %v2943_v0 }
  0x14   : > { %2765 = vrot.lane.b32.xlu1 %v2951_v3, %s2850_s14  ;;  %2760 = vrot.lane.b32.xlu0 %v2759_v4, %s2851_s15 }
  0x15   : > { %2770 = vrot.lane.b32.xlu2 %v2759_v4, %s2852_s16 }
  0x1c   : > { %463 = vrot.lane.b32.xlu1 %v2947_v2, %s2850_s14  ;;  %480 = vrot.lane.b32.xlu0 %v2945_v1, %s2851_s15 }
  0x1d   : > { %664 = vrot.lane.b32.xlu2 %v2945_v1, %s2852_s16 }
  0x24   : > { %2775 = vrot.lane.b32.xlu0 %v2951_v3, %s2853_s17  ;;  %778 = vrot.lane.b32.xlu1 %v2947_v2, %s2853_s17 }
  0x25   : > { %2780 = vrot.lane.b32.xlu2 %v2973_v5, %s2854_s18 }
  0x2c   : > { %988 = vrot.lane.b32.xlu0 %v2943_v0, %s2854_s18  ;;  %2785 = vrot.lane.b32.xlu1 %v2951_v3, %s2855_s19 }
  0x2d   : > { %1104 = vrot.lane.b32.xlu2 %v2947_v2, %s2855_s19 }
  0x34   : > { %1212 = vrot.lane.b32.xlu1 %v2943_v0, %s2856_s20  ;;  %2790 = vrot.lane.b32.xlu0 %v2973_v5, %s2856_s20  ;;  %v2724_v5 = vld [vmem:[%s3732_s2 + $0x28] sm:$0xff]  ;;  %v892_v0 = vpack.c.bf16 %v2945_v1, %v2945_v1  ;;  %v2726_v1 = vld [vmem:[%s3732_s2 + $0x38] sm:$0xff] }
  0x35   : > { %2795 = vrot.lane.b32.xlu2 %v2951_v3, %s2857_s29  ;;  %v893_v3 = vpack.c.bf16 %v2947_v2, %v2947_v2 }
  0x3c   : > { %1328 = vrot.lane.b32.xlu0 %v2947_v2, %s2857_s29 }
  0x6f   : > { %v2771_v7 = vpop.permute.xlu2 %2770 }
  0x70   : > { %v2773_v11 = vunpack.i.h.bf16 %v2771_v7  ;;  %v2772_v12 = vunpack.i.l.bf16 %v2771_v7  ;;  %v911_v7 = vsel %vm513_vm3, %v891_v6, 0 }
  0x72   : > { %v671_v39 = vsel %vm668_vm2, %v2773_v11, %v2772_v12 }
  0x73   : > { %v677_v47 = vpack.c.bf16 %v671_v39, %v671_v39  ;;  %v2728_v39 = vld [vmem:[%s3732_s2 + $0x48] sm:$0xff] }
  0x75   : > { %v697_v48 = vsel %vm513_vm3, %v677_v47, 0 }
  0x77   : > { %v665_v17 = vpop.permute.xlu2 %664 }
  0x78   : > { %v669_v22 = vsel %vm668_vm2, %v665_v17, %v2773_v11  ;;  %v670_v23 = vsel %vm668_vm2, %v2772_v12, %v665_v17 }
  0x79   : > { %v678_v27 = vpack.c.bf16 %v670_v23, %v670_v23  ;;  %v679_v28 = vpack.c.bf16 %v669_v22, %v669_v22  ;;  %v2727_v23 = vld [vmem:[%s3732_s2 + $0x40] sm:$0xff] }
  0x7b   : > { %v700_v40 = vsel %vm513_vm3, %v678_v27, 0  ;;  %v703_v41 = vsel %vm513_vm3, %v679_v28, 0 }
  0x86   : > { %v2766_v9 = vpop.permute.xlu1 %2765  ;;  %v2761_v10 = vpop.permute.xlu0 %2760 }
  0x87   : > { %v2768_v13 = vunpack.i.h.bf16 %v2766_v9  ;;  %v2767_v14 = vunpack.i.l.bf16 %v2766_v9  ;;  %v2763_v15 = vunpack.i.h.bf16 %v2761_v10  ;;  %v2762_v16 = vunpack.i.l.bf16 %v2761_v10  ;;  %v2781_v9 = vpop.permute.xlu2 %2780 }
  0x88   : > { %v2782_v11 = vunpack.i.l.bf16 %v2781_v9  ;;  %v2783_v2 = vunpack.i.h.bf16 %v2781_v9 }
  0x89   : > { %v487_v18 = vsel %vm484_vm0, %v2763_v15, %v2762_v16  ;;  %v469_v19 = vsel %vm467_vm1, %v2767_v14, %v2768_v13 }
  0x8a   : > { %v493_v20 = vpack.c.bf16 %v487_v18, %v487_v18  ;;  %v476_v21 = vpack.c.bf16 %v469_v19, %v469_v19  ;;  %v995_v19 = vsel %vm994_vm6, %v2782_v11, %v2783_v2 }
  0x8c   : > { %v515_v24 = vsel %vm513_vm3, %v493_v20, 0  ;;  %v600_v26 = vsel %vm513_vm3, %v476_v21, 0  ;;  %v1004_v21 = vpack.c.bf16 %v995_v19, %v995_v19 }
  0x8d   : > { %530 = vmatpush.bf16.msra.mxu0 %v515_v24 }
  0x8e   : > { %v464_v29 = vpop.permute.xlu1 %463  ;;  %v481_v30 = vpop.permute.xlu0 %480 }
  0x8f   : > { %v468_v31 = vsel %vm467_vm1, %v2768_v13, %v464_v29  ;;  %v470_v32 = vsel %vm467_vm1, %v464_v29, %v2767_v14  ;;  %v485_v33 = vsel %vm484_vm0, %v481_v30, %v2763_v15  ;;  %v486_v34 = vsel %vm484_vm0, %v2762_v16, %v481_v30  ;;  %v2725_v14 = vld [vmem:[%s3732_s2 + $0x30] sm:$0xff]  ;;  %v1105_v27 = vpop.permute.xlu2 %1104 }
  0x90   : > { %v477_v35 = vpack.c.bf16 %v468_v31, %v468_v31  ;;  %2511 = vmatmul.msk.bf16.vlgmr.msra.gmra.mxu0 %vm506_vm4, %v2721_v25  ;;  %v494_v36 = vpack.c.bf16 %v486_v34, %v486_v34  ;;  %v495_v37 = vpack.c.bf16 %v485_v33, %v485_v33  ;;  %v475_v38 = vpack.c.bf16 %v470_v32, %v470_v32 }
  0x91   : > { %631 = vmatpush.bf16.msrb.mxu0 %v600_v26  ;;  %v914_v15 = vsel %vm513_vm3, %v892_v0, 0  ;;  %v917_v16 = vsel %vm513_vm3, %v893_v3, 0  ;;  %v1026_v26 = vsel %vm513_vm3, %v1004_v21, 0 }
  0x92   : > { %v518_v42 = vsel %vm513_vm3, %v494_v36, 0  ;;  %v521_v43 = vsel %vm513_vm3, %v495_v37, 0  ;;  %v597_v44 = vsel %vm513_vm3, %v475_v38, 0  ;;  %v603_v45 = vsel %vm513_vm3, %v477_v35, 0  ;;  %v2729_v35 = vld [vmem:[%s3732_s2 + $0x50] sm:$0xff] }
  0x93   : > { %549 = vmatpush.bf16.msra.mxu1 %v518_v42  ;;  %568 = vmatpush.bf16.msra.mxu2 %v521_v43 }
  0x94   : > { %612 = vmatpush.bf16.msra.mxu3 %v597_v44 }
  0x95   : > { %750 = vmatpush.bf16.msra.mxu0 %v703_v41 }
  0x96   : > { %2513 = vmatmul.msk.bf16.vlgmr.msra.gmra.mxu1 %vm506_vm4, %v2721_v25  ;;  %2515 = vmatmul.msk.bf16.vlgmr.msra.gmra.mxu2 %vm506_vm4, %v2721_v25  ;;  %v2776_v51 = vpop.permute.xlu0 %2775  ;;  %v779_v52 = vpop.permute.xlu1 %778 }
  0x97   : > { %650 = vmatpush.bf16.msrb.mxu1 %v603_v45  ;;  %2525 = vmatmul.msk.bf16.vlgmr.msra.gmra.mxu3 %vm506_vm4, %v2719_v46  ;;  %v2778_v53 = vunpack.i.h.bf16 %v2776_v51  ;;  %v2777_v54 = vunpack.i.l.bf16 %v2776_v51  ;;  %v2796_v9 = vpop.permute.xlu2 %2795 }
  0x98   : > { %731 = vmatpush.bf16.msrb.mxu3 %v700_v40  ;;  %712 = vmatpush.bf16.msrb.mxu2 %v697_v48  ;;  %v2730_v40 = vld [vmem:[%s3732_s2 + $0x58] sm:$0xff] }
  0x99   : > { %v781_v55 = vsel %vm780_vm5, %v2778_v53, %v779_v52  ;;  %v783_v56 = vsel %vm780_vm5, %v779_v52, %v2777_v54  ;;  %v782_v60 = vsel %vm780_vm5, %v2777_v54, %v2778_v53  ;;  %v2731_v52 = vld [vmem:[%s3732_s2 + $0x60] sm:$0xff] }
  0x9a   : > { %v789_v57 = vpack.c.bf16 %v783_v56, %v783_v56  ;;  %v791_v58 = vpack.c.bf16 %v781_v55, %v781_v55  ;;  %v790_v62 = vpack.c.bf16 %v782_v60, %v782_v60 }
  0x9c   : > { %v809_v59 = vsel %vm513_vm3, %v789_v57, 0  ;;  %v815_v61 = vsel %vm513_vm3, %v791_v58, 0  ;;  %v812_v4 = vsel %vm513_vm3, %v790_v62, 0 }
  0x9d   : > { %824 = vmatpush.bf16.msra.mxu1 %v809_v59  ;;  %862 = vmatpush.bf16.msra.mxu3 %v815_v61 }
  0x9e   : > { %843 = vmatpush.bf16.msra.mxu2 %v812_v4  ;;  %v989_v10 = vpop.permute.xlu0 %988  ;;  %v2786_v20 = vpop.permute.xlu1 %2785 }
  0x9f   : > { %v996_v12 = vsel %vm994_vm6, %v989_v10, %v2782_v11  ;;  %v997_v18 = vsel %vm994_vm6, %v2783_v2, %v989_v10  ;;  %v2788_v24 = vunpack.i.h.bf16 %v2786_v20  ;;  %v2787_v25 = vunpack.i.l.bf16 %v2786_v20 }
  0xa0   : > { %2512 = vmatmul.msk.bf16.gmra.mxu0 %vm506_vm4, %v2722_v49  ;;  %v1003_v13 = vpack.c.bf16 %v996_v12, %v996_v12  ;;  %v1005_v22 = vpack.c.bf16 %v997_v18, %v997_v18  ;;  %v2798_v10 = vunpack.i.h.bf16 %v2796_v9  ;;  %v2797_v11 = vunpack.i.l.bf16 %v2796_v9 }
  0xa1   : > { %v1107_v28 = vsel %vm1106_vm7, %v2788_v24, %v1105_v27  ;;  %v1109_v29 = vsel %vm1106_vm7, %v1105_v27, %v2787_v25  ;;  %v1108_v33 = vsel %vm1106_vm7, %v2787_v25, %v2788_v24  ;;  %v2733_v24 = vld [vmem:[%s3732_s2 + $0x70] sm:$0xff] }
  0xa2   : > { %v1023_v17 = vsel %vm513_vm3, %v1003_v13, 0  ;;  %v1116_v30 = vpack.c.bf16 %v1107_v28, %v1107_v28  ;;  %v1117_v31 = vpack.c.bf16 %v1109_v29, %v1109_v29  ;;  %v1029_v32 = vsel %vm513_vm3, %v1005_v22, 0 }
  0xa3   : > { %v1115_v34 = vpack.c.bf16 %v1108_v33, %v1108_v33  ;;  %v1332_v0 = vsel %vm1330_vm9, %v2797_v11, %v2798_v10 }
  0xa4   : > { %v1138_v37 = vsel %vm513_vm3, %v1116_v30, 0  ;;  %v1141_v38 = vsel %vm513_vm3, %v1117_v31, 0 }
  0xa5   : > { %v1135_v36 = vsel %vm513_vm3, %v1115_v34, 0 }
  0xa6   : > { %2514 = vmatmul.msk.bf16.gmra.mxu1 %vm506_vm4, %v2722_v49  ;;  %2516 = vmatmul.msk.bf16.gmra.mxu2 %vm506_vm4, %v2722_v49  ;;  %v2791_v41 = vpop.permute.xlu0 %2790  ;;  %v1213_v45 = vpop.permute.xlu1 %1212 }
  0xa7   : > { %2526 = vmatmul.msk.bf16.gmra.mxu3 %vm506_vm4, %v2720_v50  ;;  %v2793_v42 = vunpack.i.h.bf16 %v2791_v41  ;;  %v2792_v43 = vunpack.i.l.bf16 %v2791_v41 }
  0xa9   : > { %v1221_v47 = vsel %vm1218_vm8, %v2793_v42, %v1213_v45 }
  0xaa   : > { %v1229_v49 = vpack.c.bf16 %v1221_v47, %v1221_v47 }
  0xac   : > { %v1253_v56 = vsel %vm513_vm3, %v1229_v49, 0 }
  0xae   : > { %v1329_v2 = vpop.permute.xlu0 %1328 }
  0xaf   : > { %v1331_v18 = vsel %vm1330_vm9, %v2798_v10, %v1329_v2  ;;  %v1333_v19 = vsel %vm1330_vm9, %v1329_v2, %v2797_v11  ;;  %v2736_v11 = vld [vmem:[%s3732_s2 + $0x88] sm:$0xff] }
  0xb0   : > { %2527 = vmatmul.msk.bf16.vlgmr.msrb.gmra.mxu0 %vm506_vm4, %v2719_v46  ;;  %v1340_v20 = vpack.c.bf16 %v1331_v18, %v1331_v18  ;;  %v1341_v21 = vpack.c.bf16 %v1333_v19, %v1333_v19 }
  0xb1   : > { %926 = vmatpush.bf16.msrb.mxu0 %v911_v7 }
  0xb2   : > { %v1365_v27 = vsel %vm513_vm3, %v1341_v21, 0  ;;  %v1439_v21 = vld [vmem:[%s3733_s3 + $0x18] sm:$0xff] }
  0xb6   : > { %2529 = vmatmul.msk.bf16.vlgmr.msrb.gmra.mxu1 %vm506_vm4, %v2719_v46  ;;  %2543 = vmatmul.msk.bf16.vlgmr.msrb.gmra.mxu2 %vm506_vm4, %v2723_v63  ;;  %v1220_v46 = vsel %vm1218_vm8, %v1213_v45, %v2792_v43  ;;  %v1437_v45 = vld [vmem:[%s3733_s3 + $0x8] sm:$0xff] }
  0xb7   : > { %2545 = vmatmul.msk.bf16.vlgmr.msrb.gmra.mxu3 %vm506_vm4, %v2723_v63  ;;  %945 = vmatpush.bf16.msrb.mxu1 %v914_v15  ;;  %v1227_v48 = vpack.c.bf16 %v1220_v46, %v1220_v46  ;;  %v1339_v15 = vpack.c.bf16 %v1332_v0, %v1332_v0 }
  0xb8   : > { %964 = vmatpush.bf16.msrb.mxu2 %v917_v16  ;;  %1038 = vmatpush.bf16.msrb.mxu3 %v1023_v17 }
  0xb9   : > { %v1247_v54 = vsel %vm513_vm3, %v1227_v48, 0  ;;  %v1359_v17 = vsel %vm513_vm3, %v1339_v15, 0 }
  0xc0   : > { %2528 = vmatmul.msk.bf16.gmra.mxu0 %vm506_vm4, %v2720_v50 }
  0xc6   : > { %2530 = vmatmul.msk.bf16.gmra.mxu1 %vm506_vm4, %v2720_v50  ;;  %2544 = vmatmul.msk.bf16.gmra.mxu2 %vm506_vm4, %v2724_v5  ;;  %v1219_v50 = vsel %vm1218_vm8, %v2792_v43, %v2793_v42  ;;  %v2734_v42 = vld [vmem:[%s3732_s2 + $0x78] sm:$0xff] }
  0xc7   : > { %2546 = vmatmul.msk.bf16.gmra.mxu3 %vm506_vm4, %v2724_v5  ;;  %v1228_v51 = vpack.c.bf16 %v1219_v50, %v1219_v50 }
  0xc9   : > { %v1250_v55 = vsel %vm513_vm3, %v1228_v51, 0 }
  0xd0   : > { %2547 = vmatmul.msk.bf16.vlgmr.msra.gmra.mxu0 %vm506_vm4, %v2723_v63 }
  0xd1   : > { %1057 = vmatpush.bf16.msra.mxu0 %v1026_v26  ;;  %v1362_v26 = vsel %vm513_vm3, %v1340_v20, 0 }
  0xd6   : > { %2561 = vmatmul.msk.bf16.vlgmr.msra.gmra.mxu1 %vm506_vm4, %v2725_v14  ;;  %2563 = vmatmul.msk.bf16.vlgmr.msra.gmra.mxu2 %vm506_vm4, %v2725_v14 }
  0xd7   : > { %2565 = vmatmul.msk.bf16.vlgmr.msra.gmra.mxu3 %vm506_vm4, %v2725_v14  ;;  %1076 = vmatpush.bf16.msra.mxu1 %v1029_v32 }
  0xd8   : > { %1150 = vmatpush.bf16.msra.mxu2 %v1135_v36  ;;  %1169 = vmatpush.bf16.msra.mxu3 %v1138_v37  ;;  %v1436_v36 = vld [vmem:[%s3733_s3] sm:$0xff] }
  0xe0   : > { %2548 = vmatmul.msk.bf16.gmra.mxu0 %vm506_vm4, %v2724_v5  ;;  %v2732_v5 = vld [vmem:[%s3732_s2 + $0x68] sm:$0xff] }
  0xe6   : > { %2562 = vmatmul.msk.bf16.gmra.mxu1 %vm506_vm4, %v2726_v1  ;;  %2564 = vmatmul.msk.bf16.gmra.mxu2 %vm506_vm4, %v2726_v1 }
  0xe7   : > { %2566 = vmatmul.msk.bf16.gmra.mxu3 %vm506_vm4, %v2726_v1 }
  0xf0   : > { %2579 = vmatmul.msk.bf16.vlgmr.msrb.gmra.mxu0 %vm506_vm4, %v2727_v23 }
  0xf1   : > { %1188 = vmatpush.bf16.msrb.mxu0 %v1141_v38  ;;  %v2858_v38 = vmov 0  }
  0xf2   : > { %2801 = vset.pattern.permute.xlu0 %v2858_v38  ;;  %2799 = vset.pattern.permute.xlu1 %v2858_v38 }
  0xf3   : > { %1442 = vperm.xlu0 %2801, %v1436_v36   ;;  %2800 = vset.pattern.permute.xlu2 %v2858_v38 }
  0xf4   : > { %1457 = vperm.xlu2 %2800, %v1439_v21  }
  0xf6   : > { %2581 = vmatmul.msk.bf16.vlgmr.msrb.gmra.mxu1 %vm506_vm4, %v2727_v23  ;;  %2583 = vmatmul.msk.bf16.vlgmr.msrb.gmra.mxu2 %vm506_vm4, %v2727_v23 }
  0xf7   : > { %2597 = vmatmul.msk.bf16.vlgmr.msrb.gmra.mxu3 %vm506_vm4, %v2729_v35  ;;  %1262 = vmatpush.bf16.msrb.mxu1 %v1247_v54 }
  0xf8   : > { %1281 = vmatpush.bf16.msrb.mxu2 %v1250_v55  ;;  %1300 = vmatpush.bf16.msrb.mxu3 %v1253_v56 }
 0x100   : > { %2580 = vmatmul.msk.bf16.gmra.mxu0 %vm506_vm4, %v2728_v39 }
 0x106   : > { %2582 = vmatmul.msk.bf16.gmra.mxu1 %vm506_vm4, %v2728_v39  ;;  %2584 = vmatmul.msk.bf16.gmra.mxu2 %vm506_vm4, %v2728_v39 }
 0x107   : > { %2598 = vmatmul.msk.bf16.gmra.mxu3 %vm506_vm4, %v2730_v40 }
 0x10d   : > { %v532_v44 = vpop.f32.mrf.mxu0 }
 0x110   : > { %2599 = vmatmul.msk.bf16.vlgmr.msra.gmra.mxu0 %vm506_vm4, %v2729_v35 }
 0x111   : > { %1374 = vmatpush.bf16.msra.mxu0 %v1359_v17 }
 0x113   : > { %v551_v53 = vpop.f32.mrf.mxu1 }
 0x115   : > { %v3142_v57 = vpop.f32.mrf.mxu0 }
 0x116   : > { %2601 = vmatmul.msk.bf16.vlgmr.msra.gmra.mxu1 %vm506_vm4, %v2729_v35  ;;  %2615 = vmatmul.msk.bf16.vlgmr.msra.gmra.mxu2 %vm506_vm4, %v2731_v52  ;;  %v1438_v35 = vld [vmem:[%s3733_s3 + $0x10] sm:$0xff] }
 0x117   : > { %2617 = vmatmul.msk.bf16.vlgmr.msra.gmra.mxu3 %vm506_vm4, %v2731_v52  ;;  %1393 = vmatpush.bf16.msra.mxu1 %v1362_v26 }
 0x118   : > { %1412 = vmatpush.bf16.msra.mxu2 %v1365_v27  ;;  %1452 = vperm.xlu1 %2799, %v1438_v35  }
 0x119   : > { %v570_v58 = vpop.f32.mrf.mxu2 }
 0x11a   : > { %v614_v59 = vpop.f32.mrf.mxu3 }
 0x11b   : > { %v615_v60 = vadd.f32 %v614_v59, %v532_v44  ;;  %v3147_v61 = vpop.f32.mrf.mxu1 }
 0x11d   : > { %v537_v62 = vpop.f32.mrf.mxu0 }
 0x120   : > { %2600 = vmatmul.msk.bf16.gmra.mxu0 %vm506_vm4, %v2730_v40  ;;  %1447 = vperm.xlu1 %2799, %v1437_v45  }
 0x121   : > { %v3150_v63 = vpop.f32.mrf.mxu2 }
 0x122   : > { %v3152_v4 = vpop.f32.mrf.mxu3 }
 0x123   : > { %v556_v6 = vpop.f32.mrf.mxu1 }
 0x125   : > { %v3157_v7 = vpop.f32.mrf.mxu0 }
 0x126   : > { %2602 = vmatmul.msk.bf16.gmra.mxu1 %vm506_vm4, %v2730_v40  ;;  %2616 = vmatmul.msk.bf16.gmra.mxu2 %vm506_vm4, %v2732_v5 }
 0x127   : > { %2618 = vmatmul.msk.bf16.gmra.mxu3 %vm506_vm4, %v2732_v5 }
 0x129   : > { %v575_v12 = vpop.f32.mrf.mxu2 }
 0x12a   : > { %v619_v13 = vpop.f32.mrf.mxu3 }
 0x12b   : > { %v620_v3 = vadd.f32 %v619_v13, %v537_v62  ;;  %v3165_v14 = vpop.f32.mrf.mxu1 }
 0x12d   : > { %v633_v16 = vpop.f32.mrf.mxu0 }
 0x12e   : > { %v634_v1 = vadd.f32 %v633_v16, %v551_v53 }
 0x130   : > { %2619 = vmatmul.msk.bf16.vlgmr.msrb.gmra.mxu0 %vm506_vm4, %v2731_v52  ;;  %v2735_v52 = vld [vmem:[%s3732_s2 + $0x80] sm:$0xff] }
 0x131   : > { %v3173_v22 = vpop.f32.mrf.mxu2 }
 0x132   : > { %v3175_v23 = vpop.f32.mrf.mxu3 }
 0x133   : > { %v652_v25 = vpop.f32.mrf.mxu1 }
 0x134   : > { %v653_v28 = vadd.f32 %v652_v25, %v570_v58 }
 0x135   : > { %v3182_v29 = vpop.f32.mrf.mxu0 }
 0x136   : > { %2633 = vmatmul.msk.bf16.vlgmr.msrb.gmra.mxu1 %vm506_vm4, %v2733_v24  ;;  %2635 = vmatmul.msk.bf16.vlgmr.msrb.gmra.mxu2 %vm506_vm4, %v2733_v24 }
 0x137   : > { %2637 = vmatmul.msk.bf16.vlgmr.msrb.gmra.mxu3 %vm506_vm4, %v2733_v24 }
 0x139   : > { %v714_v30 = vpop.f32.mrf.mxu2 }
 0x13a   : > { %v762_v31 = vadd.f32 %v714_v30, %v615_v60  ;;  %v733_v32 = vpop.f32.mrf.mxu3  ;;  %v1491_v30 = vld [vmem:[%s3735_s5] sm:$0xff] }
 0x13b   : > { %v763_v33 = vadd.f32 %v733_v32, %v634_v1  ;;  %v3187_v34 = vpop.f32.mrf.mxu1  ;;  %1494 = vperm.xlu2 %2800, %v1491_v30  }
 0x13d   : > { %v638_v37 = vpop.f32.mrf.mxu0 }
 0x13e   : > { %v639_v39 = vadd.f32 %v638_v37, %v556_v6 }
 0x140   : > { %2620 = vmatmul.msk.bf16.gmra.mxu0 %vm506_vm4, %v2732_v5 }
 0x141   : > { %v3196_v40 = vpop.f32.mrf.mxu2 }
 0x142   : > { %v3198_v41 = vpop.f32.mrf.mxu3 }
 0x143   : > { %v657_v43 = vpop.f32.mrf.mxu1 }
 0x144   : > { %v658_v44 = vadd.f32 %v657_v43, %v575_v12 }
 0x145   : > { %v3206_v46 = vpop.f32.mrf.mxu0 }
 0x146   : > { %2634 = vmatmul.msk.bf16.gmra.mxu1 %vm506_vm4, %v2734_v42  ;;  %2636 = vmatmul.msk.bf16.gmra.mxu2 %vm506_vm4, %v2734_v42 }
 0x147   : > { %2638 = vmatmul.msk.bf16.gmra.mxu3 %vm506_vm4, %v2734_v42 }
 0x149   : > { %v719_v47 = vpop.f32.mrf.mxu2 }
 0x14a   : > { %v768_v48 = vadd.f32 %v719_v47, %v620_v3  ;;  %v738_v49 = vpop.f32.mrf.mxu3 }
 0x14b   : > { %v769_v50 = vadd.f32 %v738_v49, %v639_v39  ;;  %v3211_v51 = vpop.f32.mrf.mxu1 }
 0x14d   : > { %v752_v53 = vpop.f32.mrf.mxu0 }
 0x14e   : > { %v764_v54 = vadd.f32 %v752_v53, %v653_v28 }
 0x150   : > { %2651 = vmatmul.msk.bf16.vlgmr.msra.gmra.mxu0 %vm506_vm4, %v2735_v52 }
 0x151   : > { %v3217_v55 = vpop.f32.mrf.mxu2 }
 0x152   : > { %v3219_v56 = vpop.f32.mrf.mxu3 }
 0x153   : > { %v826_v58 = vpop.f32.mrf.mxu1 }
 0x154   : > { %v874_v59 = vadd.f32 %v826_v58, %v762_v31 }
 0x155   : > { %v3221_v60 = vpop.f32.mrf.mxu0 }
 0x156   : > { %2653 = vmatmul.msk.bf16.vlgmr.msra.gmra.mxu1 %vm506_vm4, %v2735_v52  ;;  %2655 = vmatmul.msk.bf16.vlgmr.msra.gmra.mxu2 %vm506_vm4, %v2735_v52 }
 0x159   : > { %v845_v62 = vpop.f32.mrf.mxu2 }
 0x15a   : > { %v875_v5 = vadd.f32 %v845_v62, %v763_v33  ;;  %v864_v6 = vpop.f32.mrf.mxu3 }
 0x15b   : > { %v876_v9 = vadd.f32 %v864_v6, %v764_v54  ;;  %v3225_v10 = vpop.f32.mrf.mxu1 }
 0x15d   : > { %v757_v12 = vpop.f32.mrf.mxu0 }
 0x15e   : > { %v770_v13 = vadd.f32 %v757_v12, %v658_v44 }
 0x160   : > { %2652 = vmatmul.msk.bf16.gmra.mxu0 %vm506_vm4, %v2736_v11 }
 0x161   : > { %v3231_v0 = vpop.f32.mrf.mxu2 }
 0x162   : > { %v3233_v3 = vpop.f32.mrf.mxu3 }
 0x163   : > { %v831_v15 = vpop.f32.mrf.mxu1 }
 0x164   : > { %v880_v16 = vadd.f32 %v831_v15, %v768_v48 }
 0x165   : > { %v3235_v17 = vpop.f32.mrf.mxu0 }
 0x166   : > { %2654 = vmatmul.msk.bf16.gmra.mxu1 %vm506_vm4, %v2736_v11  ;;  %2656 = vmatmul.msk.bf16.gmra.mxu2 %vm506_vm4, %v2736_v11 }
 0x169   : > { %v850_v1 = vpop.f32.mrf.mxu2 }
 0x16a   : > { %v881_v2 = vadd.f32 %v850_v1, %v769_v50  ;;  %v869_v18 = vpop.f32.mrf.mxu3 }
 0x16b   : > { %v882_v19 = vadd.f32 %v869_v18, %v770_v13  ;;  %v3239_v20 = vpop.f32.mrf.mxu1 }
 0x16d   : > { %v928_v24 = vpop.f32.mrf.mxu0 }
 0x16e   : > { %v976_v25 = vadd.f32 %v928_v24, %v874_v59 }
 0x171   : > { %v3244_v26 = vpop.f32.mrf.mxu2 }
 0x172   : > { %v3246_v27 = vpop.f32.mrf.mxu3 }
 0x173   : > { %v947_v28 = vpop.f32.mrf.mxu1 }
 0x174   : > { %v977_v31 = vadd.f32 %v947_v28, %v875_v5 }
 0x175   : > { %v3251_v32 = vpop.f32.mrf.mxu0 }
 0x179   : > { %v966_v33 = vpop.f32.mrf.mxu2 }
 0x17a   : > { %v978_v35 = vadd.f32 %v966_v33, %v876_v9  ;;  %v1040_v36 = vpop.f32.mrf.mxu3 }
 0x17b   : > { %v1088_v37 = vadd.f32 %v1040_v36, %v976_v25  ;;  %v3253_v38 = vpop.f32.mrf.mxu1 }
 0x17d   : > { %v933_v39 = vpop.f32.mrf.mxu0 }
 0x17e   : > { %v982_v42 = vadd.f32 %v933_v39, %v880_v16 }
 0x181   : > { %v3255_v43 = vpop.f32.mrf.mxu2 }
 0x182   : > { %v1042_v48 = vpop.f32.mrf.mxu3 }
 0x183   : > { %v952_v44 = vpop.f32.mrf.mxu1 }
 0x184   : > { %v983_v45 = vadd.f32 %v952_v44, %v881_v2 }
 0x185   : > { %v3257_v47 = vpop.f32.mrf.mxu0 }
 0x189   : > { %v971_v49 = vpop.f32.mrf.mxu2 }
 0x18a   : > { %v984_v50 = vadd.f32 %v971_v49, %v882_v19  ;;  %v1045_v59 = vpop.f32.mrf.mxu3 }
 0x18b   : > { %v3259_v52 = vpop.f32.mrf.mxu1 }
 0x18d   : > { %v1059_v53 = vpop.f32.mrf.mxu0 }
 0x18e   : > { %v3261_v54 = vadd.f32 %v1059_v53, %v977_v31 }
 0x191   : > { %v3263_v58 = vpop.f32.mrf.mxu2 }
 0x192   : > { %v1047_v13 = vpop.f32.mrf.mxu3 }
 0x193   : > { %v1078_v62 = vpop.f32.mrf.mxu1 }
 0x194   : > { %v1090_v5 = vadd.f32 %v1078_v62, %v978_v35 }
 0x195   : > { %v3265_v6 = vpop.f32.mrf.mxu0 }
 0x199   : > { %v1152_v9 = vpop.f32.mrf.mxu2 }
 0x19a   : > { %v3267_v11 = vadd.f32 %v1152_v9, %v1088_v37  ;;  %v3277_v21 = vpop.f32.mrf.mxu3 }
 0x19b   : > { %v3269_v12 = vpop.f32.mrf.mxu1 }
 0x19c   : > { %3747 = vst [vmem:[#allocation3_spill] sm:$0xff] %v3269_v12  ;;  %v636_v12 = vadd.f32 %v3182_v29, %v3147_v61 }
 0x19d   : > { %v1064_v15 = vpop.f32.mrf.mxu0 }
 0x19e   : > { %v3271_v16 = vadd.f32 %v1064_v15, %v983_v45 }
 0x1a1   : > { %v1154_v1 = vpop.f32.mrf.mxu2 }
 0x1a2   : > { %v3283_v31 = vpop.f32.mrf.mxu3 }
 0x1a3   : > { %v1083_v2 = vpop.f32.mrf.mxu1 }
 0x1a4   : > { %v3273_v18 = vadd.f32 %v1083_v2, %v984_v50 }
 0x1a5   : > { %v3275_v19 = vpop.f32.mrf.mxu0 }
 0x1a6   : > { %3748 = vst [vmem:[#allocation4_spill] sm:$0xff] %v3273_v18 }
 0x1a9   : > { %v1157_v24 = vpop.f32.mrf.mxu2 }
 0x1aa   : > { %v1176_v39 = vpop.f32.mrf.mxu3 }
 0x1ab   : > { %v3279_v25 = vpop.f32.mrf.mxu1 }
 0x1ac   : > { %3749 = vst [vmem:[#allocation5_spill] sm:$0xff] %v3279_v25  ;;  %v622_v25 = vadd.f32 %v3175_v23, %v3157_v7  ;;  %v1094_v7 = vadd.f32 %v1045_v59, %v982_v42  ;;  %v641_v23 = vadd.f32 %v3206_v46, %v3165_v14  ;;  %v660_v14 = vadd.f32 %v3211_v51, %v3173_v22 }
 0x1ad   : > { %v1190_v28 = vpop.f32.mrf.mxu0  ;;  %v1207_v51 = vadd.f32 %v1176_v39, %v3271_v16 }
 0x1ae   : > { %v3281_v30 = vadd.f32 %v1190_v28, %v1090_v5 }
 0x1b0   : > { %3750 = vst [vmem:[#allocation6_spill] sm:$0xff] %v3281_v30 }
 0x1b1   : > { %v1159_v33 = vpop.f32.mrf.mxu2 }
 0x1b2   : > { %v3293_v53 = vpop.f32.mrf.mxu3 }
 0x1b3   : > { %v1264_v35 = vpop.f32.mrf.mxu1 }
 0x1b5   : > { %v3285_v36 = vpop.f32.mrf.mxu0 }
 0x1b6   : > { %3751 = vst [vmem:[#allocation7_spill] sm:$0xff] %v3285_v36  ;;  %v617_v36 = vadd.f32 %v3152_v4, %v3142_v57 }
 0x1b9   : > { %v3287_v37 = vpop.f32.mrf.mxu2 }
 0x1ba   : > { %3752 = vst [vmem:[#allocation8_spill] sm:$0xff] %v3287_v37  ;;  %v3297_v2 = vpop.f32.mrf.mxu3  ;;  %v771_v37 = vadd.f32 %v3217_v55, %v622_v25  ;;  %v1206_v25 = vadd.f32 %v1157_v24, %v1094_v7 }
 0x1bb   : > { %v1266_v44 = vpop.f32.mrf.mxu1  ;;  %3755 = vst [vmem:[#allocation11_spill] sm:$0xff] %v3297_v2 }
 0x1bc   : > { %v883_v57 = vadd.f32 %v3239_v20, %v771_v37 }
 0x1bd   : > { %v3289_v45 = vpop.f32.mrf.mxu0 }
 0x1be   : > { %3753 = vst [vmem:[#allocation9_spill] sm:$0xff] %v3289_v45  ;;  %v765_v45 = vadd.f32 %v3196_v40, %v617_v36  ;;  %v766_v36 = vadd.f32 %v3198_v41, %v636_v12  ;;  %v773_v12 = vadd.f32 %v3235_v17, %v660_v14 }
 0x1c0   : > { %v877_v2 = vadd.f32 %v3225_v10, %v765_v45  ;;  %v985_v10 = vadd.f32 %v3257_v47, %v883_v57  ;;  %v772_v45 = vadd.f32 %v3219_v56, %v641_v23  ;;  %v885_v24 = vadd.f32 %v3246_v27, %v773_v12 }
 0x1c1   : > { %v3291_v49 = vpop.f32.mrf.mxu2 }
 0x1c2   : > { %v3308_v18 = vpop.f32.mrf.mxu3  ;;  %v979_v4 = vadd.f32 %v3251_v32, %v877_v2  ;;  %v1097_v61 = vadd.f32 %v1047_v13, %v985_v10  ;;  %v655_v32 = vadd.f32 %v3187_v34, %v3150_v63  ;;  %v884_v46 = vadd.f32 %v3244_v26, %v772_v45 }
 0x1c3   : > { %v1269_v50 = vpop.f32.mrf.mxu1  ;;  %v1312_v63 = vadd.f32 %v1264_v35, %v3267_v11  ;;  %v1443_v11 = vpop.permute.xlu0 %1442 }
 0x1c4   : > { %v1091_v55 = vadd.f32 %v1042_v48, %v979_v4  ;;  %v1318_v20 = vadd.f32 %v1269_v50, %v1206_v25  ;;  %v1209_v47 = vadd.f32 %v1159_v33, %v1097_v61  ;;  %v986_v13 = vadd.f32 %v3259_v52, %v884_v46 }
 0x1c5   : > { %v3295_v62 = vpop.f32.mrf.mxu0  ;;  %v3762_v57 = vld [vmem:[#allocation9_spill] sm:$0xff] }
 0x1c6   : > { %3754 = vst [vmem:[#allocation10_spill] sm:$0xff] %v3295_v62  ;;  %v1203_v29 = vadd.f32 %v1154_v1, %v1091_v55  ;;  %v1098_v33 = vadd.f32 %v3275_v19, %v986_v13  ;;  %v1458_v19 = vpop.permute.xlu2 %1457  ;;  %v3765_v55 = vld [vmem:[#allocation7_spill] sm:$0xff]  ;;  %v3768_v13 = vld [vmem:[#allocation6_spill] sm:$0xff] }
 0x1c8   : > { %v1315_v48 = vadd.f32 %v1266_v44, %v1203_v29  ;;  %v1210_v27 = vadd.f32 %v3293_v53, %v1098_v33 }
 0x1c9   : > { %v1288_v5 = vpop.f32.mrf.mxu2 }
 0x1ca   : > { %v1307_v56 = vpop.f32.mrf.mxu3  ;;  %v1319_v44 = vadd.f32 %v1288_v5, %v1207_v51  ;;  %v3759_v5 = vld [vmem:[#allocation3_spill] sm:$0xff] }
 0x1cb   : > { %v1271_v9 = vpop.f32.mrf.mxu1 }
 0x1cc   : > { %v1321_v26 = vadd.f32 %v1271_v9, %v1209_v47 }
 0x1cd   : > { %v1376_v15 = vpop.f32.mrf.mxu0  ;;  %v3767_v47 = vld [vmem:[#allocation10_spill] sm:$0xff] }
 0x1d1   : > { %v3299_v28 = vpop.f32.mrf.mxu2 }
 0x1d2   : > { %3756 = vst [vmem:[#allocation12_spill] sm:$0xff] %v3299_v28  ;;  %v3314_v28 = vpop.permute.xlu1 %1452 }
 0x1d3   : > { %v3301_v8 = vpop.f32.mrf.mxu1 }
 0x1d4   : > { %3757 = vst [vmem:[#allocation13_spill] sm:$0xff] %v3301_v8 }
 0x1d5   : > { %v1378_v30 = vpop.f32.mrf.mxu0 }
 0x1d6   : > { %v1427_v1 = vadd.f32 %v1378_v30, %v1315_v48  ;;  %v987_v30 = vadd.f32 %v3263_v58, %v885_v24 }
 0x1d9   : > { %v3310_v62 = vpop.f32.mrf.mxu2 }
 0x1da   : > { %3758 = vst [vmem:[#allocation14_spill] sm:$0xff] %v3310_v62  ;;  %v878_v62 = vadd.f32 %v3231_v0, %v766_v36  ;;  %v767_v0 = vadd.f32 %v3221_v60, %v655_v32  ;;  %v1424_v60 = vadd.f32 %v1376_v15, %v1312_v63  ;;  %v1448_v37 = vpop.permute.xlu1 %1447  ;;  %v3760_v15 = vld [vmem:[#allocation8_spill] sm:$0xff]  ;;  %v3769_v63 = vld [vmem:[#allocation11_spill] sm:$0xff] }
 0x1db   : > { %v1397_v8 = vpop.f32.mrf.mxu1  ;;  %v3353_v50 = vadd.f32 %v1448_v37, %v1427_v1  ;;  %v3766_v45 = vld [vmem:[#allocation13_spill] sm:$0xff] }
 0x1dc   : > { %v980_v42 = vadd.f32 %v3253_v38, %v878_v62  ;;  %v879_v38 = vadd.f32 %v3233_v3, %v767_v0  ;;  %v1201_v3 = vadd.f32 %v3277_v21, %v3261_v54  ;;  %v3361_v4 = vadd.f32 %v1443_v11, %v1424_v60  ;;  %v3763_v21 = vld [vmem:[#allocation12_spill] sm:$0xff] }
 0x1dd   : > { %v1381_v40 = vpop.f32.mrf.mxu0  ;;  %v1322_v53 = vadd.f32 %v3763_v21, %v1210_v27  ;;  %v1475_v32 = vmax.f32 %v3353_v50, 0.0 }
 0x1de   : > { %v1430_v59 = vadd.f32 %v1381_v40, %v1318_v20  ;;  %v1092_v22 = vadd.f32 %v3265_v6, %v980_v42  ;;  %v981_v16 = vadd.f32 %v3255_v43, %v879_v38  ;;  %v1313_v2 = vadd.f32 %v3760_v15, %v1201_v3  ;;  %v3761_v43 = vld [vmem:[#allocation4_spill] sm:$0xff]  ;;  %v3764_v40 = vld [vmem:[#allocation5_spill] sm:$0xff]  ;;  %v1309_v20 = vpop.f32.mrf.mxu3  ;;  %v1495_v15 = vpop.permute.xlu2 %1494 }
 0x1df   : > { %v1208_v58 = vadd.f32 %v3762_v57, %v3761_v43  ;;  %v1099_v36 = vadd.f32 %v3764_v40, %v987_v30  ;;  %v458_v43 = vld [vmem:[%s3731_s1] sm:$0x7] }
 0x1e0   : > { %v1204_v52 = vadd.f32 %v3283_v31, %v1092_v22  ;;  %v3345_v35 = vadd.f32 %v3314_v28, %v1430_v59  ;;  %v1093_v9 = vadd.f32 %v3759_v5, %v981_v16  ;;  %v1425_v61 = vadd.f32 %v3766_v45, %v1313_v2 }
 0x1e1   : > { %v3331_v41 = vpop.f32.mrf.mxu2  ;;  %v1320_v25 = vadd.f32 %v1307_v56, %v1208_v58  ;;  %v1211_v48 = vadd.f32 %v3767_v47, %v1099_v36  ;;  %v1472_v56 = vmax.f32 %v3361_v4, 0.0  ;;  %v3770_v24 = vld [vmem:[#allocation14_spill] sm:$0xff] }
 0x1e2   : > { %v1316_v39 = vadd.f32 %v3291_v49, %v1204_v52  ;;  %v1478_v49 = vmax.f32 %v3345_v35, 0.0  ;;  %v1205_v10 = vadd.f32 %v3765_v55, %v1093_v9  ;;  %v3386_v51 = vadd.f32 %v1443_v11, %v1425_v61 }
 0x1e3   : > { %v1400_v34 = vpop.f32.mrf.mxu1  ;;  %v1323_v22 = vadd.f32 %v1309_v20, %v1211_v48  ;;  %v1485_v38 = vpack.c.bf16 %v1475_v32, %v1472_v56  ;;  %v2149_v48 = vld [vmem:[%s3737_s7] sm:$0xff] }
 0x1e4   : > { %v1431_v31 = vadd.f32 %v1400_v34, %v1319_v44  ;;  %v1428_v7 = vadd.f32 %v1397_v8, %v1316_v39  ;;  %v1317_v42 = vadd.f32 %v3308_v18, %v1205_v10  ;;  %v1314_v34 = vadd.f32 %v3769_v63, %v3768_v13  ;;  %v2170_v13 = vld [vmem:[%s3739_s9 + $0x10] sm:$0xff]  ;;  %v2168_v63 = vld [vmem:[%s3739_s9] sm:$0xff] }
 0x1e5   : > { %v1383_v17 = vpop.f32.mrf.mxu0  ;;  %v1473_v16 = vmax.f32 %v3386_v51, 0.0 }
 0x1e6   : > { %v1433_v6 = vadd.f32 %v1383_v17, %v1321_v26  ;;  %v3371_v14 = vadd.f32 %v3314_v28, %v1431_v31  ;;  %v3380_v59 = vadd.f32 %v1448_v37, %v1428_v7  ;;  %v1429_v26 = vadd.f32 %v3331_v41, %v1317_v42 }
 0x1e7   : > { %v1426_v33 = vadd.f32 %v3770_v24, %v1314_v34  ;;  %v2169_v34 = vld [vmem:[%s3739_s9 + $0x8] sm:$0xff] }
 0x1e8   : > { %v3355_v62 = vadd.f32 %v1458_v19, %v1433_v6  ;;  %v1479_v18 = vmax.f32 %v3371_v14, 0.0  ;;  %v1476_v17 = vmax.f32 %v3380_v59, 0.0  ;;  %v1484_v6 = vld [vmem:[%s3734_s4] sm:$0xf]  ;;  %v3408_v30 = vadd.f32 %v1448_v37, %v1429_v26 }
 0x1e9   : > { %v1419_v54 = vpop.f32.mrf.mxu2 }
 0x1ea   : > { %v1481_v23 = vmax.f32 %v3355_v62, 0.0  ;;  %v1432_v0 = vadd.f32 %v1419_v54, %v1320_v25  ;;  %v1486_v31 = vpack.c.bf16 %v1476_v17, %v1473_v16  ;;  %v1477_v5 = vmax.f32 %v3408_v30, 0.0 }
 0x1eb   : > { %v1402_v29 = vpop.f32.mrf.mxu1  ;;  %v3436_v54 = vperm.slane %v458_v43, 0 }
 0x1ec   : > { %v1488_v8 = vpack.c.bf16 %v1481_v23, %v1478_v49  ;;  %v1434_v46 = vadd.f32 %v1402_v29, %v1322_v53  ;;  %v3398_v52 = vadd.f32 %v3314_v28, %v1432_v0  ;;  %v3413_v28 = vadd.f32 %v1443_v11, %v1426_v33  ;;  %v2171_v0 = vld [vmem:[%s3739_s9 + $0x18] sm:$0xff] }
 0x1ed   : > { %v3438_v53 = vperm.slane %v458_v43, 2  ;;  %v3449_v29 = vperm.slane %v458_v43, 1 }
 0x1ee   : > { %v3382_v12 = vadd.f32 %v1458_v19, %v1434_v46  ;;  %1507 = vmatpush.bf16.msra.mxu3 %v1488_v8  ;;  %v1480_v27 = vmax.f32 %v3398_v52, 0.0  ;;  %v1474_v11 = vmax.f32 %v3413_v28, 0.0  ;;  %v2739_v52 = vld [vmem:[%s3740_s10] sm:$0x10] }
 0x1f0   : > { %v1482_v1 = vmax.f32 %v3382_v12, 0.0 }
 0x1f1   : > { %v1421_v60 = vpop.f32.mrf.mxu2 }
 0x1f2   : > { %v1489_v41 = vpack.c.bf16 %v1482_v1, %v1479_v18  ;;  %v1435_v44 = vadd.f32 %v1421_v60, %v1323_v22  ;;  %1508 = vmatpush.bf16.msra.mxu3 %v1485_v38 }
 0x1f4   : > { %v3410_v3 = vadd.f32 %v1458_v19, %v1435_v44  ;;  %v1487_v19 = vpack.c.bf16 %v1477_v5, %v1474_v11 }
 0x1f5   : > { %2657 = vmatmul.msk.bf16.vlgmr.msra.gmra.mxu3 %vm1497_vm10, %v1484_v6 }
 0x1f6   : > { %1520 = vmatpush.bf16.msrb.mxu3 %v1489_v41  ;;  %v1483_v39 = vmax.f32 %v3410_v3, 0.0 }
 0x1f8   : > { %v1490_v37 = vpack.c.bf16 %v1483_v39, %v1480_v27 }
 0x1fa   : > { %1521 = vmatpush.bf16.msrb.mxu3 %v1486_v31  ;;  %1533 = vmatpush.bf16.msrb.mxu0 %v1490_v37 }
 0x1fe   : > { %1534 = vmatpush.bf16.msrb.mxu0 %v1487_v19 }
 0x201   : > { %2659 = vmatmul.msk.bf16.vlgmr.msrb.gmra.mxu0 %vm1497_vm10, %v1484_v6 }
 0x205   : > { %2658 = vmatmul.msk.bf16.vlgmr.msrb.gmra.mxu3 %vm1497_vm10, %v1484_v6 }
 0x278   : > { %v1510_v9 = vpop.f32.mrf.mxu3 }
 0x279   : > { %v1511_v2 = vadd.f32 %v1510_v9, %v1495_v15 }
 0x27b   : > { %v1540_v58 = vmax.f32 %v1511_v2, 0.0 }
 0x27d   : > { %v3441_v36 = vmul.f32 %v3436_v54, %v1540_v58 }
 0x27e   : > { %v1536_v57 = vpop.f32.mrf.mxu0 }
 0x27f   : > { %v1537_v21 = vadd.f32 %v1536_v57, %v1495_v15 }
 0x280   : > { %v1512_v7 = vpop.f32.mrf.mxu3 }
 0x281   : > { %v1542_v40 = vmax.f32 %v1537_v21, 0.0  ;;  %v2660_v7 = vld [vmem:[%s3736_s6 + $0x4] sm:$0xf] }
 0x283   : > { %v3444_v55 = vmul.f32 %v3438_v53, %v1542_v40 }
 0x285   : > { %v2802_v10 = vpack.i.bf16 %v3444_v55, %v3441_v36 }
 0x286   : > { %v1538_v25 = vpop.f32.mrf.mxu0 }
 0x287   : > { %2803 = vrot.lane.b32.xlu1 %v2802_v10, %s2851_s15 }
 0x288   : > { %v1523_v45 = vpop.f32.mrf.mxu3 }
 0x289   : > { %v1524_v61 = vadd.f32 %v1523_v45, %v1495_v15 }
 0x28b   : > { %v1541_v20 = vmax.f32 %v1524_v61, 0.0 }
 0x28d   : > { %v3452_v8 = vmul.f32 %v3449_v29, %v1541_v20 }
 0x28f   : > { %1568 = vrot.lane.b32.xlu2 %v3452_v8, %s2851_s15  ;;  %1557 = vrot.lane.b32.xlu1 %v3444_v55, %s2850_s14  ;;  %v2807_v46 = vpack.i.bf16 %v3452_v8, %v3441_v36  ;;  %v2822_v47 = vpack.i.bf16 %v3444_v55, %v3452_v8 }
 0x290   : > { %v1525_v42 = vpop.f32.mrf.mxu3 }
 0x291   : > { %2808 = vrot.lane.b32.xlu0 %v2807_v46, %s2850_s14  ;;  %s453_s14 = scalar_lea.vmem %s3743_s13, %s2718_s24 }
 0x297   : > { %2813 = vrot.lane.b32.xlu2 %v2802_v10, %s2852_s16  ;;  %2818 = vrot.lane.b32.xlu1 %v2802_v10, %s2853_s17 }
 0x299   : > { %1684 = vrot.lane.b32.xlu0 %v3452_v8, %s2852_s16  ;;  %s2741_s16 = smul.u32 96, %s3773_s26 }
 0x29b   : > { %s3652_s22 = scalar_lea.vmem %s3742_s12, %s2741_s16 }
 0x29f   : > { %1752 = vrot.lane.b32.xlu2 %v3452_v8, %s2853_s17  ;;  %1877 = vrot.lane.b32.xlu1 %v3441_v36, %s2854_s18 }
 0x2a1   : > { %2823 = vrot.lane.b32.xlu0 %v2822_v47, %s2854_s18 }
 0x2a7   : > { %2828 = vrot.lane.b32.xlu2 %v2807_v46, %s2855_s19  ;;  %2833 = vrot.lane.b32.xlu1 %v2807_v46, %s2856_s20 }
 0x2a9   : > { %1949 = vrot.lane.b32.xlu0 %v3444_v55, %s2855_s19 }
 0x2af   : > { %2017 = vrot.lane.b32.xlu2 %v3444_v55, %s2856_s20  ;;  %2085 = vrot.lane.b32.xlu1 %v3444_v55, %s2857_s29 }
 0x2b1   : > { %2838 = vrot.lane.b32.xlu0 %v2807_v46, %s2857_s29 }
 0x2b7   : > { %2152 = vperm.xlu2 %2800, %v2149_v48   ;;  %2189 = vperm.xlu1 %2799, %v2171_v0  }
 0x2b9   : > { %2184 = vperm.xlu0 %2801, %v2170_v13  }
 0x2bf   : > { %2174 = vperm.xlu2 %2800, %v2168_v63  }
 0x2c1   : > { %2179 = vperm.xlu0 %2801, %v2169_v34  }
 0x2e9   : > { %v1569_v22 = vpop.permute.xlu2 %1568 }
 0x2f1   : > { %v2814_v26 = vpop.permute.xlu2 %2813 }
 0x2f2   : > { %v2816_v38 = vunpack.i.h.bf16 %v2814_v26  ;;  %v2815_v24 = vunpack.i.l.bf16 %v2814_v26 }
 0x2f4   : > { %v1690_v6 = vsel %vm668_vm2, %v2816_v38, %v2815_v24 }
 0x2f5   : > { %v1693_v43 = vpack.c.bf16 %v1690_v6, %v1690_v6 }
 0x2f7   : > { %v1700_v10 = vsel %vm513_vm3, %v1693_v43, 0 }
 0x2f9   : > { %v2804_v33 = vpop.permute.xlu1 %2803 }
 0x2fa   : > { %v2806_v60 = vunpack.i.h.bf16 %v2804_v33  ;;  %v2805_v41 = vunpack.i.l.bf16 %v2804_v33 }
 0x2fc   : > { %v1574_v31 = vsel %vm484_vm0, %v2806_v60, %v2805_v41  ;;  %v1573_v37 = vsel %vm484_vm0, %v2805_v41, %v1569_v22  ;;  %v1572_v19 = vsel %vm484_vm0, %v1569_v22, %v2806_v60  ;;  %v1562_v60 = vld [vmem:[%s3736_s6] sm:$0xf]  ;;  %v1753_v41 = vpop.permute.xlu2 %1752 }
 0x2fd   : > { %v1577_v9 = vpack.c.bf16 %v1574_v31, %v1574_v31  ;;  %v1578_v15 = vpack.c.bf16 %v1573_v37, %v1573_v37  ;;  %v1579_v2 = vpack.c.bf16 %v1572_v19, %v1572_v19 }
 0x2ff   : > { %v1584_v57 = vsel %vm513_vm3, %v1577_v9, 0  ;;  %v1587_v58 = vsel %vm513_vm3, %v1578_v15, 0  ;;  %v1590_v21 = vsel %vm513_vm3, %v1579_v2, 0 }
 0x300   : > { %1599 = vmatpush.bf16.msrb.mxu1 %v1584_v57  ;;  %1612 = vmatpush.bf16.msrb.mxu2 %v1587_v58 }
 0x301   : > { %1625 = vmatpush.bf16.msra.mxu3 %v1590_v21  ;;  %v1558_v40 = vpop.permute.xlu1 %1557 }
 0x303   : > { %v2809_v25 = vpop.permute.xlu0 %2808  ;;  %2661 = vmatmul.msk.bf16.vlgmr.msrb.gmra.mxu1 %vm506_vm4, %v2660_v7  ;;  %2662 = vmatmul.msk.bf16.vlgmr.msrb.gmra.mxu2 %vm506_vm4, %v2660_v7 }
 0x304   : > { %v2811_v45 = vunpack.i.h.bf16 %v2809_v25  ;;  %v2810_v61 = vunpack.i.l.bf16 %v2809_v25  ;;  %2663 = vmatmul.msk.bf16.vlgmr.msra.gmra.mxu3 %vm506_vm4, %v2660_v7  ;;  %v1821_v25 = vpack.c.bf16 %v3452_v8, %v3452_v8 }
 0x305   : > { %1715 = vmatpush.bf16.msrb.mxu3 %v1700_v10  ;;  %v1820_v10 = vpack.c.bf16 %v3441_v36, %v3441_v36 }
 0x306   : > { %v1561_v20 = vsel %vm467_vm1, %v1558_v40, %v2810_v61  ;;  %v1560_v46 = vsel %vm467_vm1, %v2810_v61, %v2811_v45  ;;  %v1559_v42 = vsel %vm467_vm1, %v2811_v45, %v1558_v40  ;;  %v2667_v45 = vld [vmem:[%s3736_s6 + $0x8] sm:$0xf]  ;;  %v1822_v61 = vpack.c.bf16 %v3444_v55, %v3444_v55 }
 0x307   : > { %v1563_v47 = vpack.c.bf16 %v1561_v20, %v1561_v20  ;;  %v1564_v48 = vpack.c.bf16 %v1560_v46, %v1560_v46  ;;  %v1565_v0 = vpack.c.bf16 %v1559_v42, %v1559_v42  ;;  %v1827_v36 = vsel %vm513_vm3, %v1820_v10, 0 }
 0x308   : > { %v1830_v8 = vsel %vm513_vm3, %v1821_v25, 0  ;;  %v1833_v55 = vsel %vm513_vm3, %v1822_v61, 0 }
 0x309   : > { %v2819_v13 = vpop.permute.xlu1 %2818  ;;  %v1635_v63 = vsel %vm513_vm3, %v1563_v47, 0  ;;  %v1638_v34 = vsel %vm513_vm3, %v1564_v48, 0  ;;  %v1641_v22 = vsel %vm513_vm3, %v1565_v0, 0  ;;  %v2829_v0 = vpop.permute.xlu2 %2828 }
 0x30a   : > { %v2821_v26 = vunpack.i.h.bf16 %v2819_v13  ;;  %v2820_v33 = vunpack.i.l.bf16 %v2819_v13  ;;  %1650 = vmatpush.bf16.msra.mxu0 %v1635_v63  ;;  %1663 = vmatpush.bf16.msra.mxu1 %v1638_v34  ;;  %v2831_v34 = vunpack.i.h.bf16 %v2829_v0 }
 0x30b   : > { %1676 = vmatpush.bf16.msra.mxu2 %v1641_v22  ;;  %v1685_v6 = vpop.permute.xlu0 %1684  ;;  %v2830_v22 = vunpack.i.l.bf16 %v2829_v0 }
 0x30c   : > { %v1688_v31 = vsel %vm668_vm2, %v1685_v6, %v2816_v38  ;;  %v1689_v37 = vsel %vm668_vm2, %v2815_v24, %v1685_v6  ;;  %v1758_v19 = vsel %vm780_vm5, %v2821_v26, %v2820_v33  ;;  %v1757_v9 = vsel %vm780_vm5, %v2820_v33, %v1753_v41 }
 0x30d   : > { %v1694_v15 = vpack.c.bf16 %v1689_v37, %v1689_v37  ;;  %v1695_v2 = vpack.c.bf16 %v1688_v31, %v1688_v31  ;;  %2664 = vmatmul.msk.bf16.vlgmr.msra.gmra.mxu0 %vm506_vm4, %v1562_v60  ;;  %v1761_v43 = vpack.c.bf16 %v1758_v19, %v1758_v19  ;;  %v1762_v57 = vpack.c.bf16 %v1757_v9, %v1757_v9  ;;  %v2671_v37 = vld [vmem:[%s3736_s6 + $0xc] sm:$0xf] }
 0x30e   : > { %v1756_v58 = vsel %vm780_vm5, %v1753_v41, %v2821_v26  ;;  %v1952_v41 = vsel %vm1106_vm7, %v2830_v22, %v2831_v34 }
 0x30f   : > { %v1703_v38 = vsel %vm513_vm3, %v1694_v15, 0  ;;  %v1706_v21 = vsel %vm513_vm3, %v1695_v2, 0  ;;  %v1768_v24 = vsel %vm513_vm3, %v1761_v43, 0  ;;  %v1771_v7 = vsel %vm513_vm3, %v1762_v57, 0 }
 0x310   : > { %1728 = vmatpush.bf16.msrb.mxu0 %v1703_v38  ;;  %1741 = vmatpush.bf16.msrb.mxu1 %v1706_v21  ;;  %v1763_v40 = vpack.c.bf16 %v1756_v58, %v1756_v58  ;;  %v1956_v19 = vpack.c.bf16 %v1952_v41, %v1952_v41 }
 0x311   : > { %1783 = vmatpush.bf16.msrb.mxu2 %v1768_v24  ;;  %1796 = vmatpush.bf16.msra.mxu3 %v1771_v7  ;;  %v1878_v47 = vpop.permute.xlu1 %1877  ;;  %v2018_v7 = vpop.permute.xlu2 %2017 }
 0x312   : > { %v1774_v20 = vsel %vm513_vm3, %v1763_v40, 0  ;;  %v1963_v43 = vsel %vm513_vm3, %v1956_v19, 0 }
 0x313   : > { %v2824_v46 = vpop.permute.xlu0 %2823  ;;  %2665 = vmatmul.msk.bf16.vlgmr.msra.gmra.mxu1 %vm506_vm4, %v1562_v60  ;;  %2666 = vmatmul.msk.bf16.vlgmr.msra.gmra.mxu2 %vm506_vm4, %v1562_v60 }
 0x314   : > { %1809 = vmatpush.bf16.msra.mxu0 %v1774_v20  ;;  %v2825_v42 = vunpack.i.l.bf16 %v2824_v46  ;;  %2668 = vmatmul.msk.bf16.vlgmr.msrb.gmra.mxu3 %vm506_vm4, %v2667_v45  ;;  %v2826_v13 = vunpack.i.h.bf16 %v2824_v46  ;;  %v2675_v20 = vld [vmem:[%s3736_s6 + $0x10] sm:$0xf] }
 0x315   : > { %1842 = vmatpush.bf16.msra.mxu1 %v1827_v36  ;;  %1855 = vmatpush.bf16.msra.mxu2 %v1830_v8 }
 0x316   : > { %1868 = vmatpush.bf16.msrb.mxu3 %v1833_v55  ;;  %v1884_v48 = vsel %vm994_vm6, %v1878_v47, %v2825_v42  ;;  %v1883_v33 = vsel %vm994_vm6, %v2825_v42, %v2826_v13  ;;  %v1885_v60 = vsel %vm994_vm6, %v2826_v13, %v1878_v47 }
 0x317   : > { %v1888_v63 = vpack.c.bf16 %v1884_v48, %v1884_v48  ;;  %v1889_v6 = vpack.c.bf16 %v1883_v33, %v1883_v33  ;;  %v1890_v31 = vpack.c.bf16 %v1885_v60, %v1885_v60 }
 0x319   : > { %v1895_v26 = vsel %vm513_vm3, %v1888_v63, 0  ;;  %v1898_v15 = vsel %vm513_vm3, %v1889_v6, 0  ;;  %v1901_v2 = vsel %vm513_vm3, %v1890_v31, 0  ;;  %v2834_v57 = vpop.permute.xlu1 %2833 }
 0x31a   : > { %v2836_v38 = vunpack.i.h.bf16 %v2834_v57  ;;  %v2835_v21 = vunpack.i.l.bf16 %v2834_v57 }
 0x31b   : > { %v1950_v9 = vpop.permute.xlu0 %1949 }
 0x31c   : > { %v1951_v58 = vsel %vm1106_vm7, %v2831_v34, %v1950_v9  ;;  %v1953_v40 = vsel %vm1106_vm7, %v1950_v9, %v2830_v22  ;;  %v2020_v25 = vsel %vm1218_vm8, %v2835_v21, %v2836_v38  ;;  %v2021_v48 = vsel %vm1218_vm8, %v2018_v7, %v2835_v21  ;;  %v2679_v34 = vld [vmem:[%s3736_s6 + $0x14] sm:$0xf] }
 0x31d   : > { %2669 = vmatmul.msk.bf16.vlgmr.msrb.gmra.mxu0 %vm506_vm4, %v2667_v45  ;;  %v1957_v24 = vpack.c.bf16 %v1951_v58, %v1951_v58  ;;  %v1958_v61 = vpack.c.bf16 %v1953_v40, %v1953_v40  ;;  %v2024_v46 = vpack.c.bf16 %v2020_v25, %v2020_v25  ;;  %v2026_v63 = vpack.c.bf16 %v2021_v48, %v2021_v48 }
 0x31e   : > { %1910 = vmatpush.bf16.msrb.mxu0 %v1895_v26 }
 0x31f   : > { %v1966_v10 = vsel %vm513_vm3, %v1957_v24, 0  ;;  %v1969_v36 = vsel %vm513_vm3, %v1958_v61, 0  ;;  %v2031_v8 = vsel %vm513_vm3, %v2024_v46, 0  ;;  %v2037_v26 = vsel %vm513_vm3, %v2026_v63, 0 }
 0x321   : > { %v2086_v22 = vpop.permute.xlu1 %2085 }
 0x323   : > { %2670 = vmatmul.msk.bf16.vlgmr.msrb.gmra.mxu1 %vm506_vm4, %v2667_v45  ;;  %2672 = vmatmul.msk.bf16.vlgmr.msrb.gmra.mxu2 %vm506_vm4, %v2671_v37  ;;  %v2019_v45 = vsel %vm1218_vm8, %v2836_v38, %v2018_v7  ;;  %v2839_v55 = vpop.permute.xlu0 %2838 }
 0x324   : > { %2673 = vmatmul.msk.bf16.vlgmr.msra.gmra.mxu3 %vm506_vm4, %v2671_v37  ;;  %1923 = vmatpush.bf16.msrb.mxu1 %v1898_v15  ;;  %v2025_v42 = vpack.c.bf16 %v2019_v45, %v2019_v45  ;;  %v2841_v0 = vunpack.i.h.bf16 %v2839_v55  ;;  %v2840_v13 = vunpack.i.l.bf16 %v2839_v55 }
 0x325   : > { %1936 = vmatpush.bf16.msrb.mxu2 %v1901_v2  ;;  %1978 = vmatpush.bf16.msra.mxu3 %v1963_v43  ;;  %v2687_v2 = vld [vmem:[%s3736_s6 + $0x1c] sm:$0xf]  ;;  %v2691_v43 = vld [vmem:[%s3736_s6 + $0x20] sm:$0xf] }
 0x326   : > { %v2034_v47 = vsel %vm513_vm3, %v2025_v42, 0  ;;  %v2088_v33 = vsel %vm1330_vm9, %v2840_v13, %v2841_v0  ;;  %v2087_v60 = vsel %vm1330_vm9, %v2841_v0, %v2086_v22  ;;  %v2089_v41 = vsel %vm1330_vm9, %v2086_v22, %v2840_v13 }
 0x327   : > { %v2092_v6 = vpack.c.bf16 %v2088_v33, %v2088_v33  ;;  %v2093_v31 = vpack.c.bf16 %v2087_v60, %v2087_v60  ;;  %v2094_v19 = vpack.c.bf16 %v2089_v41, %v2089_v41 }
 0x329   : > { %v2099_v9 = vsel %vm513_vm3, %v2092_v6, 0  ;;  %v2102_v15 = vsel %vm513_vm3, %v2093_v31, 0  ;;  %v2105_v44 = vsel %vm513_vm3, %v2094_v19, 0 }
 0x32d   : > { %2674 = vmatmul.msk.bf16.vlgmr.msra.gmra.mxu0 %vm506_vm4, %v2671_v37  ;;  %v2683_v37 = vld [vmem:[%s3736_s6 + $0x18] sm:$0xf] }
 0x32e   : > { %1991 = vmatpush.bf16.msra.mxu0 %v1966_v10 }
 0x333   : > { %2676 = vmatmul.msk.bf16.vlgmr.msra.gmra.mxu1 %vm506_vm4, %v2675_v20  ;;  %2677 = vmatmul.msk.bf16.vlgmr.msra.gmra.mxu2 %vm506_vm4, %v2675_v20 }
 0x334   : > { %2678 = vmatmul.msk.bf16.vlgmr.msrb.gmra.mxu3 %vm506_vm4, %v2675_v20  ;;  %2004 = vmatpush.bf16.msra.mxu1 %v1969_v36 }
 0x335   : > { %2046 = vmatpush.bf16.msra.mxu2 %v2031_v8  ;;  %2059 = vmatpush.bf16.msrb.mxu3 %v2034_v47 }
 0x33d   : > { %2680 = vmatmul.msk.bf16.vlgmr.msrb.gmra.mxu0 %vm506_vm4, %v2679_v34 }
 0x33e   : > { %2072 = vmatpush.bf16.msrb.mxu0 %v2037_v26 }
 0x343   : > { %2681 = vmatmul.msk.bf16.vlgmr.msrb.gmra.mxu1 %vm506_vm4, %v2679_v34  ;;  %2682 = vmatmul.msk.bf16.vlgmr.msrb.gmra.mxu2 %vm506_vm4, %v2679_v34 }
 0x344   : > { %2684 = vmatmul.msk.bf16.vlgmr.msra.gmra.mxu3 %vm506_vm4, %v2683_v37  ;;  %2114 = vmatpush.bf16.msrb.mxu1 %v2099_v9 }
 0x345   : > { %2127 = vmatpush.bf16.msrb.mxu2 %v2102_v15  ;;  %2140 = vmatpush.bf16.msra.mxu3 %v2105_v44 }
 0x34d   : > { %2685 = vmatmul.msk.bf16.vlgmr.msra.gmra.mxu0 %vm506_vm4, %v2683_v37 }
 0x353   : > { %2686 = vmatmul.msk.bf16.vlgmr.msra.gmra.mxu1 %vm506_vm4, %v2683_v37  ;;  %2688 = vmatmul.msk.bf16.vlgmr.msra.gmra.mxu2 %vm506_vm4, %v2687_v2 }
 0x354   : > { %2689 = vmatmul.msk.bf16.vlgmr.msrb.gmra.mxu3 %vm506_vm4, %v2687_v2 }
 0x35d   : > { %2690 = vmatmul.msk.bf16.vlgmr.msrb.gmra.mxu0 %vm506_vm4, %v2687_v2 }
 0x363   : > { %2692 = vmatmul.msk.bf16.vlgmr.msrb.gmra.mxu1 %vm506_vm4, %v2691_v43  ;;  %2693 = vmatmul.msk.bf16.vlgmr.msrb.gmra.mxu2 %vm506_vm4, %v2691_v43 }
 0x364   : > { %2694 = vmatmul.msk.bf16.vlgmr.msra.gmra.mxu3 %vm506_vm4, %v2691_v43 }
 0x380   : > { %v1601_v57 = vpop.f32.mrf.mxu1 }
 0x386   : > { %v1614_v58 = vpop.f32.mrf.mxu2 }
 0x387   : > { %v1627_v38 = vpop.f32.mrf.mxu3 }
 0x388   : > { %v1603_v21 = vpop.f32.mrf.mxu1 }
 0x38a   : > { %v1652_v24 = vpop.f32.mrf.mxu0 }
 0x38b   : > { %v1653_v7 = vadd.f32 %v1652_v24, %v1601_v57 }
 0x38e   : > { %v1616_v40 = vpop.f32.mrf.mxu2 }
 0x38f   : > { %v1629_v10 = vpop.f32.mrf.mxu3 }
 0x390   : > { %v1665_v25 = vpop.f32.mrf.mxu1 }
 0x391   : > { %v1666_v45 = vadd.f32 %v1665_v25, %v1614_v58 }
 0x392   : > { %v1654_v61 = vpop.f32.mrf.mxu0 }
 0x396   : > { %v1678_v20 = vpop.f32.mrf.mxu2 }
 0x397   : > { %v1717_v46 = vpop.f32.mrf.mxu3  ;;  %v1679_v42 = vadd.f32 %v1678_v20, %v1627_v38 }
 0x398   : > { %v1667_v36 = vpop.f32.mrf.mxu1 }
 0x39a   : > { %v1730_v8 = vpop.f32.mrf.mxu0 }
 0x39b   : > { %v1748_v47 = vadd.f32 %v1730_v8, %v1666_v45  ;;  %v1747_v45 = vadd.f32 %v1717_v46, %v1653_v7 }
 0x39e   : > { %v1680_v55 = vpop.f32.mrf.mxu2 }
 0x39f   : > { %v1719_v48 = vpop.f32.mrf.mxu3 }
 0x3a0   : > { %v1743_v0 = vpop.f32.mrf.mxu1 }
 0x3a2   : > { %v1732_v13 = vpop.f32.mrf.mxu0 }
 0x3a6   : > { %v1785_v63 = vpop.f32.mrf.mxu2 }
 0x3a7   : > { %v1798_v34 = vpop.f32.mrf.mxu3  ;;  %v1815_v61 = vadd.f32 %v1785_v63, %v1747_v45 }
 0x3a8   : > { %v1745_v22 = vpop.f32.mrf.mxu1 }
 0x3a9   : > { %v1749_v22 = vadd.f32 %v1743_v0, %v1679_v42 }
 0x3aa   : > { %v1811_v26 = vpop.f32.mrf.mxu0 }
 0x3ae   : > { %v1787_v33 = vpop.f32.mrf.mxu2 }
 0x3af   : > { %v1800_v60 = vpop.f32.mrf.mxu3 }
 0x3b0   : > { %v1844_v41 = vpop.f32.mrf.mxu1  ;;  %v1816_v60 = vadd.f32 %v1798_v34, %v1748_v47 }
 0x3b1   : > { %v1874_v55 = vadd.f32 %v1844_v41, %v1815_v61 }
 0x3b2   : > { %v1813_v6 = vpop.f32.mrf.mxu0 }
 0x3b3   : > { %v1817_v6 = vadd.f32 %v1811_v26, %v1749_v22 }
 0x3b6   : > { %v1857_v31 = vpop.f32.mrf.mxu2 }
 0x3b7   : > { %v1870_v37 = vpop.f32.mrf.mxu3 }
 0x3b8   : > { %v1846_v19 = vpop.f32.mrf.mxu1 }
 0x3ba   : > { %v1912_v9 = vpop.f32.mrf.mxu0 }
 0x3bb   : > { %v1942_v13 = vadd.f32 %v1912_v9, %v1874_v55 }
 0x3be   : > { %v1859_v15 = vpop.f32.mrf.mxu2 }
 0x3bf   : > { %v1872_v44 = vpop.f32.mrf.mxu3 }
 0x3c0   : > { %v1925_v2 = vpop.f32.mrf.mxu1 }
 0x3c2   : > { %v1914_v43 = vpop.f32.mrf.mxu0 }
 0x3c3   : > { %v1875_v43 = vadd.f32 %v1857_v31, %v1816_v60  ;;  %v2738_v60 = vld [vmem:[%s3738_s8 + $0x8] sm:$0xff] }
 0x3c5   : > { %v1943_v7 = vadd.f32 %v1925_v2, %v1875_v43 }
 0x3c6   : > { %v1938_v57 = vpop.f32.mrf.mxu2 }
 0x3c7   : > { %v1980_v58 = vpop.f32.mrf.mxu3 }
 0x3c8   : > { %v1927_v38 = vpop.f32.mrf.mxu1  ;;  %v2010_v33 = vadd.f32 %v1980_v58, %v1942_v13 }
 0x3c9   : > { %v1876_v38 = vadd.f32 %v1870_v37, %v1817_v6  ;;  %v2737_v37 = vld [vmem:[%s3738_s8] sm:$0xff]  ;;  %v2185_v6 = vpop.permute.xlu0 %2184 }
 0x3ca   : > { %v1993_v21 = vpop.f32.mrf.mxu0 }
 0x3cb   : > { %v1944_v46 = vadd.f32 %v1938_v57, %v1876_v38 }
 0x3ce   : > { %v1940_v24 = vpop.f32.mrf.mxu2 }
 0x3cf   : > { %v1982_v40 = vpop.f32.mrf.mxu3 }
 0x3d0   : > { %v2006_v10 = vpop.f32.mrf.mxu1 }
 0x3d1   : > { %v2012_v41 = vadd.f32 %v2006_v10, %v1944_v46 }
 0x3d2   : > { %v1995_v25 = vpop.f32.mrf.mxu0 }
 0x3d3   : > { %v2153_v25 = vpop.permute.xlu2 %2152 }
 0x3d6   : > { %v2048_v20 = vpop.f32.mrf.mxu2 }
 0x3d7   : > { %v2061_v36 = vpop.f32.mrf.mxu3  ;;  %v2078_v19 = vadd.f32 %v2048_v20, %v2010_v33 }
 0x3d8   : > { %v2008_v8 = vpop.f32.mrf.mxu1 }
 0x3d9   : > { %v2011_v8 = vadd.f32 %v1993_v21, %v1943_v7 }
 0x3da   : > { %v2074_v48 = vpop.f32.mrf.mxu0 }
 0x3db   : > { %v2079_v9 = vadd.f32 %v2061_v36, %v2011_v8  ;;  %v2080_v42 = vadd.f32 %v2074_v48, %v2012_v41 }
 0x3de   : > { %v2050_v15 = vpop.f32.mrf.mxu2 }
 0x3df   : > { %v2063_v44 = vpop.f32.mrf.mxu3 }
 0x3e0   : > { %v2116_v24 = vpop.f32.mrf.mxu1 }
 0x3e1   : > { %v2146_v40 = vadd.f32 %v2116_v24, %v2078_v19  ;;  %v2175_v19 = vpop.permute.xlu2 %2174 }
 0x3e2   : > { %v2076_v63 = vpop.f32.mrf.mxu0 }
 0x3e3   : > { %v2155_v45 = vadd.f32 %v2153_v25, %v2146_v40 }
 0x3e5   : > { %v2158_v61 = vmax.f32 %v2155_v45, 0.0 }
 0x3e6   : > { %v2129_v47 = vpop.f32.mrf.mxu2 }
 0x3e7   : > { %v2165_v0 = vpack.c.bf16 %v2158_v61, %v2158_v61  ;;  %v2142_v34 = vpop.f32.mrf.mxu3  ;;  %v2147_v26 = vadd.f32 %v2129_v47, %v2079_v9 }
 0x3e8   : > { %v2148_v58 = vadd.f32 %v2142_v34, %v2080_v42  ;;  %v2118_v20 = vpop.f32.mrf.mxu1 }
 0x3e9   : > { %v2209_v31 = vsel %vm513_vm3, %v2165_v0, 0  ;;  %v2156_v2 = vadd.f32 %v2153_v25, %v2147_v26 }
 0x3ea   : > { %v2157_v57 = vadd.f32 %v2153_v25, %v2148_v58  ;;  %2224 = vmatpush.bf16.msra.mxu0 %v2209_v31  ;;  %v2180_v25 = vpop.permute.xlu0 %2179 }
 0x3eb   : > { %v2159_v21 = vmax.f32 %v2156_v2, 0.0 }
 0x3ec   : > { %v2160_v10 = vmax.f32 %v2157_v57, 0.0 }
 0x3ed   : > { %2703 = vmatmul.msk.bf16.vlgmr.msra.gmra.mxu0 %vm506_vm4, %v2737_v37  ;;  %v2166_v36 = vpack.c.bf16 %v2159_v21, %v2159_v21  ;;  %v2190_v21 = vpop.permute.xlu1 %2189 }
 0x3ee   : > { %v2167_v55 = vpack.c.bf16 %v2160_v10, %v2160_v10  ;;  %v2131_v13 = vpop.f32.mrf.mxu2 }
 0x3ef   : > { %v2144_v48 = vpop.f32.mrf.mxu3  ;;  %v2212_v22 = vsel %vm513_vm3, %v2166_v36, 0 }
 0x3f0   : > { %v2215_v33 = vsel %vm513_vm3, %v2167_v55, 0  ;;  %2243 = vmatpush.bf16.msra.mxu1 %v2212_v22 }
 0x3f1   : > { %2262 = vmatpush.bf16.msra.mxu2 %v2215_v33 }
 0x3f3   : > { %2705 = vmatmul.msk.bf16.vlgmr.msra.gmra.mxu1 %vm506_vm4, %v2737_v37 }
 0x3f4   : > { %2707 = vmatmul.msk.bf16.vlgmr.msra.gmra.mxu2 %vm506_vm4, %v2737_v37 }
 0x3fd   : > { %2704 = vmatmul.msk.bf16.gmra.mxu0 %vm506_vm4, %v2738_v60 }
 0x403   : > { %2706 = vmatmul.msk.bf16.gmra.mxu1 %vm506_vm4, %v2738_v60 }
 0x404   : > { %2708 = vmatmul.msk.bf16.gmra.mxu2 %vm506_vm4, %v2738_v60 }
 0x46a   : > { %v2226_v15 = vpop.f32.mrf.mxu0 }
 0x46b   : > { %v2227_v44 = vadd.f32 %v2226_v15, %v2175_v19 }
 0x46d   : > { %v2274_v43 = vadd.f32 %v2227_v44, %v1472_v56 }
 0x46f   : > { %v2286_v38 = vmax.f32 %v2274_v43, 0.0 }
 0x470   : > { %v2245_v40 = vpop.f32.mrf.mxu1 }
 0x471   : > { %v3655_v24 = vmul.f32 %v2286_v38, %v3436_v54  ;;  %v2246_v7 = vadd.f32 %v2245_v40, %v2175_v19 }
 0x472   : > { %v2228_v46 = vpop.f32.mrf.mxu0 }
 0x473   : > { %2310 = vst [vmem:[%s3652_s22] sm:$0xff] %v3655_v24  ;;  %v2229_v4 = vadd.f32 %v2228_v46, %v2180_v25  ;;  %v2275_v56 = vadd.f32 %v2246_v7, %v1473_v16 }
 0x475   : > { %v2277_v63 = vadd.f32 %v2229_v4, %v1475_v32  ;;  %v2287_v45 = vmax.f32 %v2275_v56, 0.0 }
 0x477   : > { %v2289_v8 = vmax.f32 %v2277_v63, 0.0  ;;  %v2264_v41 = vpop.f32.mrf.mxu2  ;;  %v3664_v61 = vmul.f32 %v2287_v45, %v3449_v29 }
 0x478   : > { %v2265_v9 = vadd.f32 %v2264_v41, %v2175_v19  ;;  %v2247_v0 = vpop.f32.mrf.mxu1 }
 0x479   : > { %v2301_v42 = vmul.f32 %v2289_v8, %v3436_v54  ;;  %2311 = vst [vmem:[%s3652_s22 + $0x8] sm:$0xff] %v3664_v61  ;;  %v2248_v16 = vadd.f32 %v2247_v0, %v2180_v25 }
 0x47a   : > { %v2276_v51 = vadd.f32 %v2265_v9, %v1474_v11  ;;  %v2231_v47 = vpop.f32.mrf.mxu0 }
 0x47b   : > { %2313 = vst [vmem:[%s3652_s22 + $0x18] sm:$0xff] %v2301_v42  ;;  %v2232_v50 = vadd.f32 %v2231_v47, %v2185_v6  ;;  %v2278_v34 = vadd.f32 %v2248_v16, %v1476_v17  ;;  %v2324_v43 = vpack.c.bf16 %v2301_v42, %v3655_v24  ;;  %v2394_v16 = vld [vmem:[%s3741_s11] sm:$0xff] }
 0x47c   : > { %v2288_v32 = vmax.f32 %v2276_v51, 0.0 }
 0x47d   : > { %v2280_v26 = vadd.f32 %v2232_v50, %v1478_v49  ;;  %v2290_v20 = vmax.f32 %v2278_v34, 0.0  ;;  %v2395_v34 = vld [vmem:[%s3741_s11 + $0x8] sm:$0x3] }
 0x47e   : > { %v2300_v58 = vmul.f32 %v2288_v32, %v3438_v53 }
 0x47f   : > { %v2292_v31 = vmax.f32 %v2280_v26, 0.0  ;;  %v2266_v37 = vpop.f32.mrf.mxu2  ;;  %v2302_v28 = vmul.f32 %v2290_v20, %v3449_v29 }
 0x480   : > { %2312 = vst [vmem:[%s3652_s22 + $0x10] sm:$0xff] %v2300_v58  ;;  %v2267_v11 = vadd.f32 %v2266_v37, %v2180_v25  ;;  %v2250_v57 = vpop.f32.mrf.mxu1 }
 0x481   : > { %v2304_v2 = vmul.f32 %v2292_v31, %v3436_v54  ;;  %2314 = vst [vmem:[%s3652_s22 + $0x20] sm:$0xff] %v2302_v28  ;;  %v2251_v59 = vadd.f32 %v2250_v57, %v2185_v6  ;;  %v2325_v4 = vpack.c.bf16 %v2302_v28, %v3664_v61 }
 0x482   : > { %v2279_v35 = vadd.f32 %v2267_v11, %v1477_v5  ;;  %v2233_v49 = vpop.f32.mrf.mxu0 }
 0x483   : > { %2316 = vst [vmem:[%s3652_s22 + $0x30] sm:$0xff] %v2304_v2  ;;  %v2234_v17 = vadd.f32 %v2233_v49, %v2190_v21  ;;  %v2281_v36 = vadd.f32 %v2251_v59, %v1479_v18 }
 0x484   : > { %v2291_v10 = vmax.f32 %v2279_v35, 0.0 }
 0x485   : > { %v2283_v55 = vadd.f32 %v2234_v17, %v1481_v23  ;;  %v2293_v13 = vmax.f32 %v2281_v36, 0.0 }
 0x486   : > { %v2303_v48 = vmul.f32 %v2291_v10, %v3438_v53 }
 0x487   : > { %v2295_v22 = vmax.f32 %v2283_v55, 0.0  ;;  %v2269_v33 = vpop.f32.mrf.mxu2  ;;  %v2305_v30 = vmul.f32 %v2293_v13, %v3449_v29 }
 0x488   : > { %2315 = vst [vmem:[%s3652_s22 + $0x28] sm:$0xff] %v2303_v48  ;;  %v2270_v5 = vadd.f32 %v2269_v33, %v2185_v6  ;;  %v2252_v19 = vpop.f32.mrf.mxu1 }
 0x489   : > { %v2307_v60 = vmul.f32 %v2295_v22, %v3436_v54  ;;  %2317 = vst [vmem:[%s3652_s22 + $0x38] sm:$0xff] %v2305_v30  ;;  %v2253_v18 = vadd.f32 %v2252_v19, %v2190_v21  ;;  %v2711_v54 = vld [vmem:[%s3740_s10] sm:$0xf] }
 0x48a   : > { %v2282_v14 = vadd.f32 %v2270_v5, %v1480_v27  ;;  %v2712_v38 = vor.u32 %v2739_v52, %v2711_v54 }
 0x48b   : > { %2319 = vst [vmem:[%s3652_s22 + $0x48] sm:$0xff] %v2307_v60  ;;  %v2327_v62 = vpack.c.bf16 %v2307_v60, %v2304_v2  ;;  %v2284_v15 = vadd.f32 %v2253_v18, %v1482_v1 }
 0x48c   : > { %v2294_v23 = vmax.f32 %v2282_v14, 0.0 }
 0x48d   : > { %2344 = vmatpush.bf16.msrb.mxu3 %v2327_v62  ;;  %v2296_v6 = vmax.f32 %v2284_v15, 0.0 }
 0x48e   : > { %v2306_v44 = vmul.f32 %v2294_v23, %v3438_v53 }
 0x48f   : > { %v2271_v27 = vpop.f32.mrf.mxu2  ;;  %v2308_v12 = vmul.f32 %v2296_v6, %v3449_v29  ;;  %v2326_v29 = vpack.c.bf16 %v2303_v48, %v2300_v58 }
 0x490   : > { %2318 = vst [vmem:[%s3652_s22 + $0x40] sm:$0xff] %v2306_v44  ;;  %v2272_v1 = vadd.f32 %v2271_v27, %v2190_v21 }
 0x491   : > { %2345 = vmatpush.bf16.msrb.mxu3 %v2324_v43  ;;  %2320 = vst [vmem:[%s3652_s22 + $0x50] sm:$0xff] %v2308_v12  ;;  %v2328_v40 = vpack.c.bf16 %v2308_v12, %v2305_v30 }
 0x492   : > { %v2285_v25 = vadd.f32 %v2272_v1, %v1483_v39 }
 0x494   : > { %v2297_v7 = vmax.f32 %v2285_v25, 0.0  ;;  %2713 = vmatmul.msk.bf16.vlgmr.msrb.gmra.mxu3 %vm1497_vm10, %v2712_v38 }
 0x495   : > { %2358 = vmatpush.bf16.msra.mxu3 %v2328_v40 }
 0x496   : > { %v2309_v46 = vmul.f32 %v2297_v7, %v3438_v53 }
 0x498   : > { %2321 = vst [vmem:[%s3652_s22 + $0x58] sm:$0xff] %v2309_v46  ;;  %v2329_v24 = vpack.c.bf16 %v2309_v46, %v2306_v44 }
 0x499   : > { %2359 = vmatpush.bf16.msra.mxu3 %v2325_v4 }
 0x49a   : > { %2372 = vmatpush.bf16.msrb.mxu0 %v2329_v24 }
 0x49e   : > { %2373 = vmatpush.bf16.msrb.mxu0 %v2326_v29 }
 0x4a1   : > { %2715 = vmatmul.msk.bf16.vlgmr.msrb.gmra.mxu0 %vm1497_vm10, %v2712_v38 }
 0x4a4   : > { %2714 = vmatmul.msk.bf16.vlgmr.msra.gmra.mxu3 %vm1497_vm10, %v2712_v38 }
 0x517   : > { %v2347_v3 = vpop.f32.mrf.mxu3 }
 0x51e   : > { %v2375_v56 = vpop.f32.mrf.mxu0 }
 0x51f   : > { %v2349_v39 = vpop.f32.mrf.mxu3 }
 0x520   : > { %v2385_v61 = vsel %vm2384_vm11, %v2349_v39, 0.0 }
 0x526   : > { %v2377_v41 = vpop.f32.mrf.mxu0 }
 0x527   : > { %v2361_v63 = vpop.f32.mrf.mxu3  ;;  %v2388_v0 = vsel %vm2384_vm11, %v2377_v41, 0.0 }
 0x528   : > { %v2380_v45 = vadd.f32 %v2361_v63, %v2347_v3 }
 0x52a   : > { %v2381_v8 = vadd.f32 %v2380_v45, %v2375_v56 }
 0x52c   : > { %2382 = vadd.xlane.f32.xlu1 %v2381_v8 }
 0x52f   : > { %v2363_v53 = vpop.f32.mrf.mxu3 }
 0x530   : > { %v2386_v9 = vsel %vm2384_vm11, %v2363_v53, 0.0 }
 0x531   : > { %v2387_v42 = vadd.f32 %v2386_v9, %v2385_v61 }
 0x533   : > { %v2389_v51 = vadd.f32 %v2388_v0, %v2387_v42 }
 0x535   : > { %2390 = vadd.xlane.f32.xlu2 %v2389_v51 }
 0x59f   : > { %v2383_v47 = vpop.xlane.xlu1 %2382 }
 0x5a0   : > { %v2392_v50 = vmul.f32 0.00390625, %v2383_v47 }
 0x5a2   : > { %v2396_v32 = vadd.f32 %v2394_v16, %v2392_v50 }
 0x5a4   : > { %2399 = vst.msk [vmem:[%s453_s14] sm:$0xff] %vm2398_vm12, %v2396_v32 }
 0x5a8   : > { %v2391_v26 = vpop.xlane.xlu2 %2390 }
 0x5a9   : > { %v2393_v58 = vmul.f32 0.00390625, %v2391_v26 }
 0x5ab   : > { %v2397_v20 = vadd.f32 %v2395_v34, %v2393_v58 }
 0x5ad   : > { %2401 = vst.msk [vmem:[%s453_s14 + $0x8] sm:$0x3] %vm2400_vm13, %v2397_v20 }
 0x5ae PF: > { %s24_s25 = sadd.s32 1, %s2848_s25  }
 0x5af   : > { %p21_p4 = scmp.ge.s32.totalorder %s24_s25, 4  }
 0x5b1   :  { %23 = sbr.rel (!%p21_p4) target bundleno = 1 (0x1), region = 126 }

</bundles_post_ra>
